<compile_context>
chip_gen: v7x
topology: tpu7x:2x2x1
jax: 0.10.0
libtpu: 0.0.40
codegen_flags: <defaults>
</compile_context>

<pallas_src>
import jax
import jax.numpy as jnp
import numpy as np
from jax.experimental import pallas as pl
from jax.experimental.pallas import tpu as pltpu  # noqa: F401  (TPU backend)


# ----------------------------- kernel ---------------------------------------

def make_encoder_kernel(N, H):
    K1, K2, K3 = 5, 5, 3
    C3 = 20

    def kernel(x_ref, w1_ref, b1_ref, s1_ref, w2_ref, b2_ref, s2_ref,
               w3_ref, b3_ref, wfc_ref, bfc_ref, out_ref):

        def conv_relu(a, w_ref, b_ref, K):
            # a: (Win, R*Cin).  im2col along the sublane (W) axis, then ONE
            # matmul against the block-diagonal (K*R*Cin, R*Cout) weight.
            wout = a.shape[0] - K + 1
            cols = jnp.concatenate([a[k:k + wout, :] for k in range(K)],
                                   axis=1)                       # (wout, K*R*Cin)
            y = jnp.dot(cols, w_ref[...],
                        preferred_element_type=jnp.float32)      # (wout, R*Cout)
            return jnp.maximum(y + b_ref[...], 0.0)

        def maxpool2(a, s_ref):
            # MaxPool2d((1,2)), floor mode: pairwise max of adjacent sublanes,
            # then an exact 0/1 even-row selection matmul (no strided slices).
            b = jnp.maximum(a[:-1, :], a[1:, :])                  # (Win-1, L)
            return jnp.dot(s_ref[...], b,
                           preferred_element_type=jnp.float32)    # (Win//2, L)

        a = x_ref[...]                                            # (W0, R*Cin)
        a = maxpool2(conv_relu(a, w1_ref, b1_ref, K1), s1_ref)
        a = maxpool2(conv_relu(a, w2_ref, b2_ref, K2), s2_ref)
        a = conv_relu(a, w3_ref, b3_ref, K3)                      # (W3, R*20)
        # TODO(synk): Dropout(0.5) is identity at inference; training-mode
        # Bernoulli masking is not implemented.

        W3 = wfc_ref.shape[0]
        HC = H * C3                                               # per-sample lanes
        rows = []
        for n in range(N):                                        # tiny static loops
            acc = bfc_ref[...]                                    # (1, HP)
            for w in range(W3):
                acc = acc + jnp.dot(a[w:w + 1, n * HC:(n + 1) * HC],
                                    wfc_ref[w],
                                    preferred_element_type=jnp.float32)
            rows.append(acc)
        # Single lane-dense store of the whole (N, HP) output, final ReLU fused.
        out_ref[...] = jnp.maximum(jnp.concatenate(rows, axis=0), 0.0)

    return kernel


# ------------------------------- wrapper -------------------------------------

def encoder_forward(x_nchw, params, hidden):
    w1, b1, w2, b2, w3, b3, fcw, fcb = params        # torch-layout parameters
    N, Cin, H, W0 = x_nchw.shape
    R = N * H
    HP = ((hidden + 127) // 128) * 128               # lane-dense padded hidden

    # Width bookkeeping (all conv kernels have height 1).
    W1 = W0 - 5 + 1
    P1 = W1 // 2
    W2 = P1 - 5 + 1
    P2 = W2 // 2
    W3o = P2 - 3 + 1                                  # must equal 2 (Linear size)

    # Activations layout: (W, R*Cin), lane index = (n*H + h)*Cin + ci.
    a0 = jnp.transpose(x_nchw, (3, 0, 2, 1)).reshape(W0, R * Cin)
    a0 = a0.astype(jnp.float32)

    # Conv weights -> im2col block-diagonal form (built once, outside kernel).
    def conv_bd(w_oihw, b, R):
        wt = jnp.transpose(w_oihw[:, :, 0, :], (2, 1, 0)).astype(jnp.float32)  # (K,Ci,Co)
        K, Ci, Co = wt.shape
        eye = jnp.eye(R, dtype=jnp.float32)
        wbd = jnp.einsum('kic,rs->krisc', wt, eye).reshape(K * R * Ci, R * Co)
        bbd = jnp.tile(b.reshape(1, Co).astype(jnp.float32), (1, R))
        return wbd, bbd

    w1bd, b1bd = conv_bd(w1, b1, R)
    w2bd, b2bd = conv_bd(w2, b2, R)
    w3bd, b3bd = conv_bd(w3, b3, R)

    # Even-row selection matrices for the two maxpools (exact 0/1 matrices).
    def pool_sel(win):
        wo = win // 2
        s = np.zeros((wo, win - 1), np.float32)
        s[np.arange(wo), 2 * np.arange(wo)] = 1.0
        return jnp.asarray(s)

    s1 = pool_sel(W1)
    s2 = pool_sel(W2)

    # FC weight: torch Linear weight (hidden, 20*H*W3o) with flatten order
    # (c, h, w); permute to kernel layout (W3o, H*20, hidden) and pad lanes.
    wfc = fcw.reshape(hidden, 20, H, W3o)
    wfc = jnp.transpose(wfc, (3, 2, 1, 0)).reshape(W3o, H * 20, hidden)
    wfc = jnp.pad(wfc, ((0, 0), (0, 0), (0, HP - hidden))).astype(jnp.float32)
    bfc = jnp.pad(fcb.reshape(1, hidden), ((0, 0), (0, HP - hidden)))
    bfc = bfc.astype(jnp.float32)

    out = pl.pallas_call(
        make_encoder_kernel(N, H),
        out_shape=jax.ShapeDtypeStruct((N, HP), jnp.float32),
    )(a0, w1bd, b1bd, s1, w2bd, b2bd, s2, w3bd, b3bd, wfc, bfc)
    return out[:, :hidden]


# ------------------------- deterministic parameters --------------------------

def init_params(key, Cin, H, hidden):
    keys = jax.random.split(key, 8)

    def nrm(k, shape, scale=0.1):
        return scale * jax.random.normal(k, shape, dtype=jnp.float32)

    # Torch layouts: Conv2d weight (Cout, Cin, 1, K), Linear weight (out, in).
    w1 = nrm(keys[0], (50, Cin, 1, 5)); b1 = nrm(keys[1], (50,))
    w2 = nrm(keys[2], (40, 50, 1, 5));  b2 = nrm(keys[3], (40,))
    w3 = nrm(keys[4], (20, 40, 1, 3));  b3 = nrm(keys[5], (20,))
    linear_size = 20 * H * 2
    wfc = nrm(keys[6], (hidden, linear_size)); bfc = nrm(keys[7], (hidden,))
    return (w1, b1, w2, b2, w3, b3, wfc, bfc)


# ---------------------------- pure-JAX reference ------------------------------

def reference_forward(x, params):
    w1, b1, w2, b2, w3, b3, fcw, fcb = params

    def conv(x, w, b):
        y = jax.lax.conv_general_dilated(
            x, w, (1, 1), 'VALID', dimension_numbers=('NCHW', 'OIHW', 'NCHW'))
        return y + b.reshape(1, -1, 1, 1)

    def pool(x):
        return jax.lax.reduce_window(x, -jnp.inf, jax.lax.max,
                                     (1, 1, 1, 2), (1, 1, 1, 2), 'VALID')

    h = pool(jnp.maximum(conv(x, w1, b1), 0.0))
    h = pool(jnp.maximum(conv(h, w2, b2), 0.0))
    h = jnp.maximum(conv(h, w3, b3), 0.0)
    flat = h.reshape(x.shape[0], -1)                  # torch flatten order (c,h,w)
    y = flat @ fcw.T + fcb[None, :]
    return jnp.maximum(y, 0.0)


# ----------------------------------- main -------------------------------------

if __name__ == "__main__":
    # input_shape = (Cin, H, W) = (4, 3, 28); W=28 yields final width 2 as
    # required by linear_size = 20 * input_shape[1] * 2.
    N, Cin, H, W0 = 2, 4, 3, 28
    hidden = 32

    key = jax.random.PRNGKey(0)
    kx, kp = jax.random.split(key)
    x = jax.random.normal(kx, (N, Cin, H, W0), dtype=jnp.float32)
    params = init_params(kp, Cin, H, hidden)

    out = encoder_forward(x, params, hidden)
    out = jax.block_until_ready(out)

    ref = reference_forward(x, params)
    assert out.shape == (N, hidden), out.shape
    np.testing.assert_allclose(np.asarray(out), np.asarray(ref),
                               rtol=2e-4, atol=2e-4)
    print("KERNEL_OK")
</pallas_src>

<mosaic_0001>
module attributes {stable_mosaic.version = 11 : i64} {
  func.func @kernel(%arg0: memref<28x24xf32, #tpu.memory_space<vmem>>, %arg1: memref<120x300xf32, #tpu.memory_space<vmem>>, %arg2: memref<1x300xf32, #tpu.memory_space<vmem>>, %arg3: memref<12x23xf32, #tpu.memory_space<vmem>>, %arg4: memref<1500x240xf32, #tpu.memory_space<vmem>>, %arg5: memref<1x240xf32, #tpu.memory_space<vmem>>, %arg6: memref<4x7xf32, #tpu.memory_space<vmem>>, %arg7: memref<720x120xf32, #tpu.memory_space<vmem>>, %arg8: memref<1x120xf32, #tpu.memory_space<vmem>>, %arg9: memref<2x60x128xf32, #tpu.memory_space<vmem>>, %arg10: memref<1x128xf32, #tpu.memory_space<vmem>>, %arg11: memref<2x128xf32, #tpu.memory_space<vmem>>) attributes {dimension_semantics = [], scalar_prefetch = 0 : i64, scratch_operands = 0 : i64, tpu.core_type = #tpu.core_type<tc>} {
    %c0 = arith.constant 0 : index
    %c0_0 = arith.constant 0 : index
    %0 = vector.load %arg0[%c0, %c0_0] : memref<28x24xf32, #tpu.memory_space<vmem>>, vector<28x24xf32>
    %1 = vector.extract_strided_slice %0 {offsets = [0, 0], sizes = [24, 24], strides = [1, 1]} : vector<28x24xf32> to vector<24x24xf32>
    %2 = vector.extract_strided_slice %0 {offsets = [1, 0], sizes = [24, 24], strides = [1, 1]} : vector<28x24xf32> to vector<24x24xf32>
    %3 = vector.extract_strided_slice %0 {offsets = [2, 0], sizes = [24, 24], strides = [1, 1]} : vector<28x24xf32> to vector<24x24xf32>
    %4 = vector.extract_strided_slice %0 {offsets = [3, 0], sizes = [24, 24], strides = [1, 1]} : vector<28x24xf32> to vector<24x24xf32>
    %5 = vector.extract_strided_slice %0 {offsets = [4, 0], sizes = [24, 24], strides = [1, 1]} : vector<28x24xf32> to vector<24x24xf32>
    %6 = tpu.concatenate %1, %2, %3, %4, %5 in 1 : vector<24x24xf32>, vector<24x24xf32>, vector<24x24xf32>, vector<24x24xf32>, vector<24x24xf32> -> vector<24x120xf32>
    %c0_1 = arith.constant 0 : index
    %c0_2 = arith.constant 0 : index
    %7 = vector.load %arg1[%c0_1, %c0_2] : memref<120x300xf32, #tpu.memory_space<vmem>>, vector<120x300xf32>
    %cst = arith.constant dense<0.000000e+00> : vector<24x300xf32>
    %8 = tpu.matmul %6, %7, %cst {dimension_numbers = #tpu.dot_dimension_numbers<[1], [0], [0], [1], [0, 0, 1, 1], [], []>} : vector<24x120xf32>, vector<120x300xf32>, vector<24x300xf32> -> vector<24x300xf32>
    %c0_3 = arith.constant 0 : index
    %c0_4 = arith.constant 0 : index
    %9 = vector.load %arg2[%c0_3, %c0_4] : memref<1x300xf32, #tpu.memory_space<vmem>>, vector<1x300xf32>
    %10 = vector.broadcast %9 : vector<1x300xf32> to vector<24x300xf32>
    %11 = arith.addf %8, %10 : vector<24x300xf32>
    %cst_5 = arith.constant 0.000000e+00 : f32
    %12 = vector.broadcast %cst_5 : f32 to vector<24x300xf32>
    %13 = arith.maximumf %11, %12 : vector<24x300xf32>
    %14 = vector.extract_strided_slice %13 {offsets = [0, 0], sizes = [23, 300], strides = [1, 1]} : vector<24x300xf32> to vector<23x300xf32>
    %15 = vector.extract_strided_slice %13 {offsets = [1, 0], sizes = [23, 300], strides = [1, 1]} : vector<24x300xf32> to vector<23x300xf32>
    %16 = arith.maximumf %14, %15 : vector<23x300xf32>
    %c0_6 = arith.constant 0 : index
    %c0_7 = arith.constant 0 : index
    %17 = vector.load %arg3[%c0_6, %c0_7] : memref<12x23xf32, #tpu.memory_space<vmem>>, vector<12x23xf32>
    %cst_8 = arith.constant dense<0.000000e+00> : vector<12x300xf32>
    %18 = tpu.matmul %17, %16, %cst_8 {dimension_numbers = #tpu.dot_dimension_numbers<[1], [0], [0], [1], [0, 0, 1, 1], [], []>} : vector<12x23xf32>, vector<23x300xf32>, vector<12x300xf32> -> vector<12x300xf32>
    %19 = vector.extract_strided_slice %18 {offsets = [0, 0], sizes = [8, 300], strides = [1, 1]} : vector<12x300xf32> to vector<8x300xf32>
    %20 = vector.extract_strided_slice %18 {offsets = [1, 0], sizes = [8, 300], strides = [1, 1]} : vector<12x300xf32> to vector<8x300xf32>
    %21 = vector.extract_strided_slice %18 {offsets = [2, 0], sizes = [8, 300], strides = [1, 1]} : vector<12x300xf32> to vector<8x300xf32>
    %22 = vector.extract_strided_slice %18 {offsets = [3, 0], sizes = [8, 300], strides = [1, 1]} : vector<12x300xf32> to vector<8x300xf32>
    %23 = vector.extract_strided_slice %18 {offsets = [4, 0], sizes = [8, 300], strides = [1, 1]} : vector<12x300xf32> to vector<8x300xf32>
    %24 = tpu.concatenate %19, %20, %21, %22, %23 in 1 : vector<8x300xf32>, vector<8x300xf32>, vector<8x300xf32>, vector<8x300xf32>, vector<8x300xf32> -> vector<8x1500xf32>
    %c0_9 = arith.constant 0 : index
    %c0_10 = arith.constant 0 : index
    %25 = vector.load %arg4[%c0_9, %c0_10] : memref<1500x240xf32, #tpu.memory_space<vmem>>, vector<1500x240xf32>
    %cst_11 = arith.constant dense<0.000000e+00> : vector<8x240xf32>
    %26 = tpu.matmul %24, %25, %cst_11 {dimension_numbers = #tpu.dot_dimension_numbers<[1], [0], [0], [1], [0, 0, 1, 1], [], []>} : vector<8x1500xf32>, vector<1500x240xf32>, vector<8x240xf32> -> vector<8x240xf32>
    %c0_12 = arith.constant 0 : index
    %c0_13 = arith.constant 0 : index
    %27 = vector.load %arg5[%c0_12, %c0_13] : memref<1x240xf32, #tpu.memory_space<vmem>>, vector<1x240xf32>
    %28 = vector.broadcast %27 : vector<1x240xf32> to vector<8x240xf32>
    %29 = arith.addf %26, %28 : vector<8x240xf32>
    %cst_14 = arith.constant 0.000000e+00 : f32
    %30 = vector.broadcast %cst_14 : f32 to vector<8x240xf32>
    %31 = arith.maximumf %29, %30 : vector<8x240xf32>
    %32 = vector.extract_strided_slice %31 {offsets = [0, 0], sizes = [7, 240], strides = [1, 1]} : vector<8x240xf32> to vector<7x240xf32>
    %33 = vector.extract_strided_slice %31 {offsets = [1, 0], sizes = [7, 240], strides = [1, 1]} : vector<8x240xf32> to vector<7x240xf32>
    %34 = arith.maximumf %32, %33 : vector<7x240xf32>
    %c0_15 = arith.constant 0 : index
    %c0_16 = arith.constant 0 : index
    %35 = vector.load %arg6[%c0_15, %c0_16] : memref<4x7xf32, #tpu.memory_space<vmem>>, vector<4x7xf32>
    %cst_17 = arith.constant dense<0.000000e+00> : vector<4x240xf32>
    %36 = tpu.matmul %35, %34, %cst_17 {dimension_numbers = #tpu.dot_dimension_numbers<[1], [0], [0], [1], [0, 0, 1, 1], [], []>} : vector<4x7xf32>, vector<7x240xf32>, vector<4x240xf32> -> vector<4x240xf32>
    %37 = vector.extract_strided_slice %36 {offsets = [0, 0], sizes = [2, 240], strides = [1, 1]} : vector<4x240xf32> to vector<2x240xf32>
    %38 = vector.extract_strided_slice %36 {offsets = [1, 0], sizes = [2, 240], strides = [1, 1]} : vector<4x240xf32> to vector<2x240xf32>
    %39 = vector.extract_strided_slice %36 {offsets = [2, 0], sizes = [2, 240], strides = [1, 1]} : vector<4x240xf32> to vector<2x240xf32>
    %40 = tpu.concatenate %37, %38, %39 in 1 : vector<2x240xf32>, vector<2x240xf32>, vector<2x240xf32> -> vector<2x720xf32>
    %c0_18 = arith.constant 0 : index
    %c0_19 = arith.constant 0 : index
    %41 = vector.load %arg7[%c0_18, %c0_19] : memref<720x120xf32, #tpu.memory_space<vmem>>, vector<720x120xf32>
    %cst_20 = arith.constant dense<0.000000e+00> : vector<2x120xf32>
    %42 = tpu.matmul %40, %41, %cst_20 {dimension_numbers = #tpu.dot_dimension_numbers<[1], [0], [0], [1], [0, 0, 1, 1], [], []>} : vector<2x720xf32>, vector<720x120xf32>, vector<2x120xf32> -> vector<2x120xf32>
    %c0_21 = arith.constant 0 : index
    %c0_22 = arith.constant 0 : index
    %43 = vector.load %arg8[%c0_21, %c0_22] : memref<1x120xf32, #tpu.memory_space<vmem>>, vector<1x120xf32>
    %44 = vector.broadcast %43 : vector<1x120xf32> to vector<2x120xf32>
    %45 = arith.addf %42, %44 : vector<2x120xf32>
    %cst_23 = arith.constant 0.000000e+00 : f32
    %46 = vector.broadcast %cst_23 : f32 to vector<2x120xf32>
    %47 = arith.maximumf %45, %46 : vector<2x120xf32>
    %c0_24 = arith.constant 0 : index
    %c0_25 = arith.constant 0 : index
    %48 = vector.load %arg10[%c0_24, %c0_25] : memref<1x128xf32, #tpu.memory_space<vmem>>, vector<1x128xf32>
    %49 = vector.extract_strided_slice %47 {offsets = [0, 0], sizes = [1, 60], strides = [1, 1]} : vector<2x120xf32> to vector<1x60xf32>
    %c0_26 = arith.constant 0 : index
    %c0_27 = arith.constant 0 : index
    %c0_28 = arith.constant 0 : index
    %50 = vector.load %arg9[%c0_26, %c0_27, %c0_28] : memref<2x60x128xf32, #tpu.memory_space<vmem>>, vector<1x60x128xf32>
    %51 = vector.shape_cast %50 : vector<1x60x128xf32> to vector<60x128xf32>
    %cst_29 = arith.constant dense<0.000000e+00> : vector<1x128xf32>
    %52 = tpu.matmul %49, %51, %cst_29 {dimension_numbers = #tpu.dot_dimension_numbers<[1], [0], [0], [1], [0, 0, 1, 1], [], []>} : vector<1x60xf32>, vector<60x128xf32>, vector<1x128xf32> -> vector<1x128xf32>
    %53 = arith.addf %48, %52 : vector<1x128xf32>
    %54 = vector.extract_strided_slice %47 {offsets = [1, 0], sizes = [1, 60], strides = [1, 1]} : vector<2x120xf32> to vector<1x60xf32>
    %c1 = arith.constant 1 : index
    %c0_30 = arith.constant 0 : index
    %c0_31 = arith.constant 0 : index
    %55 = vector.load %arg9[%c1, %c0_30, %c0_31] : memref<2x60x128xf32, #tpu.memory_space<vmem>>, vector<1x60x128xf32>
    %56 = vector.shape_cast %55 : vector<1x60x128xf32> to vector<60x128xf32>
    %cst_32 = arith.constant dense<0.000000e+00> : vector<1x128xf32>
    %57 = tpu.matmul %54, %56, %cst_32 {dimension_numbers = #tpu.dot_dimension_numbers<[1], [0], [0], [1], [0, 0, 1, 1], [], []>} : vector<1x60xf32>, vector<60x128xf32>, vector<1x128xf32> -> vector<1x128xf32>
    %58 = arith.addf %53, %57 : vector<1x128xf32>
    %c0_33 = arith.constant 0 : index
    %c0_34 = arith.constant 0 : index
    %59 = vector.load %arg10[%c0_33, %c0_34] : memref<1x128xf32, #tpu.memory_space<vmem>>, vector<1x128xf32>
    %60 = vector.extract_strided_slice %47 {offsets = [0, 60], sizes = [1, 60], strides = [1, 1]} : vector<2x120xf32> to vector<1x60xf32>
    %c0_35 = arith.constant 0 : index
    %c0_36 = arith.constant 0 : index
    %c0_37 = arith.constant 0 : index
    %61 = vector.load %arg9[%c0_35, %c0_36, %c0_37] : memref<2x60x128xf32, #tpu.memory_space<vmem>>, vector<1x60x128xf32>
    %62 = vector.shape_cast %61 : vector<1x60x128xf32> to vector<60x128xf32>
    %cst_38 = arith.constant dense<0.000000e+00> : vector<1x128xf32>
    %63 = tpu.matmul %60, %62, %cst_38 {dimension_numbers = #tpu.dot_dimension_numbers<[1], [0], [0], [1], [0, 0, 1, 1], [], []>} : vector<1x60xf32>, vector<60x128xf32>, vector<1x128xf32> -> vector<1x128xf32>
    %64 = arith.addf %59, %63 : vector<1x128xf32>
    %65 = vector.extract_strided_slice %47 {offsets = [1, 60], sizes = [1, 60], strides = [1, 1]} : vector<2x120xf32> to vector<1x60xf32>
    %c1_39 = arith.constant 1 : index
    %c0_40 = arith.constant 0 : index
    %c0_41 = arith.constant 0 : index
    %66 = vector.load %arg9[%c1_39, %c0_40, %c0_41] : memref<2x60x128xf32, #tpu.memory_space<vmem>>, vector<1x60x128xf32>
    %67 = vector.shape_cast %66 : vector<1x60x128xf32> to vector<60x128xf32>
    %cst_42 = arith.constant dense<0.000000e+00> : vector<1x128xf32>
    %68 = tpu.matmul %65, %67, %cst_42 {dimension_numbers = #tpu.dot_dimension_numbers<[1], [0], [0], [1], [0, 0, 1, 1], [], []>} : vector<1x60xf32>, vector<60x128xf32>, vector<1x128xf32> -> vector<1x128xf32>
    %69 = arith.addf %64, %68 : vector<1x128xf32>
    %70 = tpu.concatenate %58, %69 in 0 : vector<1x128xf32>, vector<1x128xf32> -> vector<2x128xf32>
    %cst_43 = arith.constant 0.000000e+00 : f32
    %71 = vector.broadcast %cst_43 : f32 to vector<2x128xf32>
    %72 = arith.maximumf %70, %71 : vector<2x128xf32>
    %c0_44 = arith.constant 0 : index
    %c0_45 = arith.constant 0 : index
    %73 = vector.load %arg11[%c0_44, %c0_45] : memref<2x128xf32, #tpu.memory_space<vmem>>, vector<2x128xf32>
    tpu.vector_store %arg11[%c0_44, %c0_45], %72 {strides = array<i32>} : memref<2x128xf32, #tpu.memory_space<vmem>>, vector<2x128xf32>,
    return
  }
}

</mosaic_0001>

<bundles_post_ra>
// kernel: tpu_custom_call.1
= control target key start
LH: loop header
LB: loop body
LE: loop exit
PB: predicated region body
PF: predicated region fallthrough
CT: control target
= control target key end

     0   :  { %vm47_vm0 = vcmask 1046528   ;;  %vm81_vm1 = vcmask 1044480   ;;  %vm64_vm2 = vcmask 1045504   ;;  %vm98_vm3 = vcmask 1043456   ;;  %s3228_s23 = smov 24   ;;  %s3229_s24 = smov 72   ;;  %s5191_s0 = inlined_call_operand.vmem [shape: f32[28,24], index: 0, kind: input, shape index: {}]   ;;  %s5192_s1 = inlined_call_operand.vmem [shape: f32[120,300], index: 1, kind: input, shape index: {}]   ;;  %s5193_s2 = inlined_call_operand.vmem [shape: f32[1,300], index: 2, kind: input, shape index: {}]   ;;  %s5194_s3 = inlined_call_operand.vmem [shape: f32[12,23], index: 3, kind: input, shape index: {}]   ;;  %s5195_s4 = inlined_call_operand.vmem [shape: f32[1500,240], index: 4, kind: input, shape index: {}]   ;;  %s5196_s5 = inlined_call_operand.vmem [shape: f32[1,240], index: 5, kind: input, shape index: {}]   ;;  %s5197_s6 = inlined_call_operand.vmem [shape: f32[4,7], index: 6, kind: input, shape index: {}]   ;;  %s5198_s7 = inlined_call_operand.vmem [shape: f32[720,120], index: 7, kind: input, shape index: {}]   ;;  %s5199_s8 = inlined_call_operand.vmem [shape: f32[1,120], index: 8, kind: input, shape index: {}]   ;;  %s5200_s9 = inlined_call_operand.vmem [shape: f32[2,60,128], index: 9, kind: input, shape index: {}]   ;;  %s5201_s10 = inlined_call_operand.vmem [shape: f32[1,128], index: 10, kind: input, shape index: {}]   ;;  %s5202_s11 = inlined_call_operand.hbm [shape: f32[2,128], index: 11, kind: output, shape index: {}]  }
   0x1   :  { %v3305_v0 = vld [vmem:[%s5191_s0] sm:$0xff]  ;;  %v3310_v1 = vld [vmem:[%s5191_s0 + $0x8] sm:$0xff]  ;;  %v3321_v8 = vld [vmem:[%s5191_s0 + $0x10] sm:$0xff]  ;;  %s3230_s18 = smov 48   ;;  %s3231_s19 = smov 96   ;;  %v3232_v43 = vmov 0.0  }
   0x2   :  { %v48_v2 = vrot.slane %v3305_v0, 1  ;;  %v49_v3 = vrot.slane %v3310_v1, 1  ;;  %v82_v4 = vrot.slane %v3305_v0, 3  ;;  %v83_v5 = vrot.slane %v3310_v1, 3  ;;  %v132_v13 = vld [vmem:[%s5192_s1 + $0x8] sm:$0xff]  ;;  %v135_v18 = vld [vmem:[%s5192_s1 + $0x20] sm:$0xff]  ;;  %267 = vmatprep.mubr.f32.mxu1 %v3232_v43  ;;  %499 = vmatprep.mubr.f32.mxu0 %v3232_v43 }
   0x3   :  { %v65_v6 = vrot.slane %v3305_v0, 2  ;;  %v66_v7 = vrot.slane %v3310_v1, 2  ;;  %v99_v11 = vrot.slane %v3305_v0, 4  ;;  %v100_v12 = vrot.slane %v3310_v1, 4  ;;  %v131_v19 = vld [vmem:[%s5192_s1] sm:$0xff]  ;;  %v134_v20 = vld [vmem:[%s5192_s1 + $0x18] sm:$0xff] }
   0x4   :  { %v50_v9 = vsel %vm47_vm0, %v48_v2, %v49_v3  ;;  %v84_v10 = vsel %vm81_vm1, %v82_v4, %v83_v5  ;;  %v51_v16 = vrot.slane %v3321_v8, 1  ;;  %v68_v17 = vrot.slane %v3321_v8, 2  ;;  %v138_v21 = vld [vmem:[%s5192_s1 + $0x38] sm:$0xff]  ;;  %v141_v22 = vld [vmem:[%s5192_s1 + $0x50] sm:$0xff]  ;;  %v140_v27 = vld [vmem:[%s5192_s1 + $0x48] sm:$0xff] }
   0x5   :  { %55 = vrot.lane.b32.xlu0 %v50_v9, %s3228_s23  ;;  %89 = vrot.lane.b32.xlu1 %v84_v10, %s3229_s24  ;;  %v67_v14 = vsel %vm64_vm2, %v65_v6, %v66_v7  ;;  %v101_v15 = vsel %vm98_vm3, %v99_v11, %v100_v12  ;;  %v85_v23 = vrot.slane %v3321_v8, 3  ;;  %v2567_v24 = vpack.c.bf16 %v135_v18, %v132_v13  ;;  %v137_v26 = vld [vmem:[%s5192_s1 + $0x30] sm:$0xff]  ;;  %v42_v31 = vld [vmem:[%s5191_s0 + $0x18] sm:$0xf] }
   0x6   :  { %v2569_v25 = vpack.c.bf16 %v134_v20, %v131_v19  ;;  %v52_v28 = vsel %vm47_vm0, %v49_v3, %v51_v16  ;;  %v69_v29 = vsel %vm64_vm2, %v66_v7, %v68_v17  ;;  %v102_v30 = vrot.slane %v3321_v8, 4  ;;  %v144_v33 = vld [vmem:[%s5192_s1 + $0x68] sm:$0xff]  ;;  %v147_v34 = vld [vmem:[%s5192_s1 + $0x80] sm:$0xff]  ;;  %v146_v38 = vld [vmem:[%s5192_s1 + $0x78] sm:$0xff] }
   0x7   :  { %v2571_v32 = vpack.c.bf16 %v141_v22, %v138_v21  ;;  %2568 = vmatprep.subr.bf16.mxu1 %v2567_v24  ;;  %v2573_v35 = vpack.c.bf16 %v140_v27, %v137_v26  ;;  %v53_v36 = vrot.slane %v42_v31, 1  ;;  %v143_v37 = vld [vmem:[%s5192_s1 + $0x60] sm:$0xff]  ;;  %v86_v39 = vsel %vm81_vm1, %v83_v5, %v85_v23  ;;  %v150_v44 = vld [vmem:[%s5192_s1 + $0x98] sm:$0xff]  ;;  %v153_v45 = vld [vmem:[%s5192_s1 + $0xb0] sm:$0xff] }
   0x8   :  { %2570 = vmatpush1.bf16.msra.mxu1 %v2569_v25  ;;  %v103_v40 = vsel %vm98_vm3, %v100_v12, %v102_v30  ;;  %v70_v41 = vrot.slane %v42_v31, 2  ;;  %v2575_v42 = vpack.c.bf16 %v147_v34, %v144_v33  ;;  %v2577_v46 = vpack.c.bf16 %v146_v38, %v143_v37  ;;  %v149_v48 = vld [vmem:[%s5192_s1 + $0x90] sm:$0xff]  ;;  %v152_v49 = vld [vmem:[%s5192_s1 + $0xa8] sm:$0xff]  ;;  %v159_v55 = vld [vmem:[%s5192_s1 + $0xe0] sm:$0xff] }
   0x9   :  { %72 = vrot.lane.b32.xlu0 %v67_v14, %s3230_s18  ;;  %106 = vrot.lane.b32.xlu1 %v101_v15, %s3231_s19  ;;  %v87_v47 = vrot.slane %v42_v31, 3  ;;  %v54_v50 = vsel %vm47_vm0, %v51_v16, %v53_v36  ;;  %v104_v52 = vrot.slane %v42_v31, 4  ;;  %v2579_v53 = vpack.c.bf16 %v153_v45, %v150_v44  ;;  %v156_v54 = vld [vmem:[%s5192_s1 + $0xc8] sm:$0xff] }
   0xa   :  { %2572 = vmatprep.subr.bf16.mxu1 %v2571_v32  ;;  %v71_v51 = vsel %vm64_vm2, %v68_v17, %v70_v41 }
   0xc   :  { %2574 = vmatpush1.bf16.msra.mxu1 %v2573_v35 }
   0xd   :  { %57 = vrot.lane.b32.xlu0 %v52_v28, %s3228_s23  ;;  %74 = vrot.lane.b32.xlu1 %v69_v29, %s3230_s18 }
   0xe   :  { %2576 = vmatprep.subr.bf16.mxu1 %v2575_v42 }
  0x11   :  { %91 = vrot.lane.b32.xlu0 %v86_v39, %s3229_s24  ;;  %108 = vrot.lane.b32.xlu1 %v103_v40, %s3231_s19 }
  0x12   :  { %16 = vsyncpa [#allocation3], 0  ;;  %2578 = vmatpush1.bf16.msra.mxu1 %v2577_v46  ;;  %v2581_v56 = vpack.c.bf16 %v152_v49, %v149_v48  ;;  %v155_v57 = vld [vmem:[%s5192_s1 + $0xc0] sm:$0xff]  ;;  %v158_v58 = vld [vmem:[%s5192_s1 + $0xd8] sm:$0xff]  ;;  %v88_v59 = vsel %vm81_vm1, %v85_v23, %v87_v47  ;;  %v105_v60 = vsel %vm98_vm3, %v102_v30, %v104_v52  ;;  %v2583_v61 = vpack.c.bf16 %v159_v55, %v156_v54  ;;  %s3235_s26 = smov 44   ;;  %s3236_s27 = smov 88  }
  0x13   :  { %2580 = vmatprep.subr.bf16.mxu1 %v2579_v53  ;;  %v162_v62 = vld [vmem:[%s5192_s1 + $0xf8] sm:$0xff]  ;;  %v165_v63 = vld [vmem:[%s5192_s1 + $0x110] sm:$0xff]  ;;  %v2585_v2 = vpack.c.bf16 %v158_v58, %v155_v57  ;;  %v164_v5 = vld [vmem:[%s5192_s1 + $0x108] sm:$0xff]  ;;  %v3233_v16 = vmov 0.0|0.0   ;;  %vm115_vm4 = vcmask 195584   ;;  %vm119_vm5 = vcmask 392192  }
  0x14   :  { %v2587_v3 = vpack.c.bf16 %v165_v63, %v162_v62  ;;  %v161_v4 = vld [vmem:[%s5192_s1 + $0xf0] sm:$0xff]  ;;  %v168_v6 = vld [vmem:[%s5192_s1 + $0x128] sm:$0xff]  ;;  %v171_v7 = vld [vmem:[%s5192_s1 + $0x140] sm:$0xff]  ;;  %vm123_vm6 = vcmask 588800   ;;  %vm127_vm7 = vcmask 785408   ;;  %vm193_vm8 = vcmask 982016  }
  0x15   :  { %59 = vrot.lane.b32.xlu0 %v54_v50, %s3228_s23  ;;  %76 = vrot.lane.b32.xlu1 %v71_v51, %s3230_s18  ;;  %v2589_v9 = vpack.c.bf16 %v164_v5, %v161_v4  ;;  %v2591_v10 = vpack.c.bf16 %v171_v7, %v168_v6  ;;  %v167_v11 = vld [vmem:[%s5192_s1 + $0x120] sm:$0xff]  ;;  %v170_v12 = vld [vmem:[%s5192_s1 + $0x138] sm:$0xff]  ;;  %vm3234_vm9 = vmmov 0   ;;  %vm419_vm10 = vcmask 187392   ;;  %s3237_s28 = smov 4   ;;  %s3239_s14 = smov 112  }
  0x16   :  { %2582 = vmatpush1.bf16.msra.mxu1 %v2581_v56  ;;  %v2593_v13 = vpack.c.bf16 %v170_v12, %v167_v11  ;;  %v174_v14 = vld [vmem:[%s5192_s1 + $0x158] sm:$0xff]  ;;  %v173_v15 = vld [vmem:[%s5192_s1 + $0x150] sm:$0xff]  ;;  %v136_v20 = vld [vmem:[%s5192_s1 + $0x28] sm:$0xff]  ;;  %v178_v62 = vlaneseq  ;;  %vm608_vm11 = vcmask 359424   ;;  %vm629_vm12 = vcmask 719872   ;;  %s3240_s15 = smov 68  }
  0x17   :  { %2584 = vmatprep.subr.bf16.mxu1 %v2583_v61  ;;  %v133_v19 = vld [vmem:[%s5192_s1 + $0x10] sm:$0xff]  ;;  %v139_v27 = vld [vmem:[%s5192_s1 + $0x40] sm:$0xff]  ;;  %v142_v28 = vld [vmem:[%s5192_s1 + $0x58] sm:$0xff]  ;;  %vm651_vm13 = vcmask 31744   ;;  %vm1068_vm14 = vcmask 752640   ;;  %vm3238_vm15 = vmmov 1  }
  0x18   :  { %v2596_v25 = vpack.c.bf16 %v136_v20, %v133_v19  ;;  %v2599_v32 = vpack.c.bf16 %v142_v28, %v139_v27  ;;  %v145_v33 = vld [vmem:[%s5192_s1 + $0x70] sm:$0xff]  ;;  %v148_v34 = vld [vmem:[%s5192_s1 + $0x88] sm:$0xff]  ;;  %v151_v40 = vld [vmem:[%s5192_s1 + $0xa0] sm:$0xff]  ;;  %v3534_v63 = vshrl.u32 %v178_v62, 7  ;;  %s3241_s22 = smov [#allocation2]  }
  0x19   :  { %93 = vrot.lane.b32.xlu0 %v88_v59, %s3229_s24  ;;  %110 = vrot.lane.b32.xlu1 %v105_v60, %s3231_s19  ;;  %v2602_v38 = vpack.c.bf16 %v148_v34, %v145_v33  ;;  %v154_v41 = vld [vmem:[%s5192_s1 + $0xb8] sm:$0xff]  ;;  %v157_v47 = vld [vmem:[%s5192_s1 + $0xd0] sm:$0xff]  ;;  %s2269_s25 = sshll.u32 %s3241_s22, 4  ;;  %s2270_s25 = int_to_ptr.vmem [resolvable:$true] %s2269_s25 }
  0x1a   :  { %2586 = vmatpush1.bf16.msra.mxu1 %v2585_v2  ;;  %v2605_v46 = vpack.c.bf16 %v154_v41, %v151_v40  ;;  %v160_v48 = vld [vmem:[%s5192_s1 + $0xe8] sm:$0xff]  ;;  %v163_v54 = vld [vmem:[%s5192_s1 + $0x100] sm:$0xff]  ;;  %v166_v55 = vld [vmem:[%s5192_s1 + $0x118] sm:$0xff]  ;;  %v3537_v2 = vsub.s32 0, %v3534_v63  ;;  %v184_v4 = vsub.s32 1, %v3534_v63  ;;  %p3209_p1 = scmp.lt.s32.totalorder %s2270_s25, %s2270_s25 }
  0x1b   :  { %2588 = vmatprep.subr.bf16.mxu1 %v2587_v3  ;;  %v2608_v53 = vpack.c.bf16 %v160_v48, %v157_v47  ;;  %v2611_v56 = vpack.c.bf16 %v166_v55, %v163_v54  ;;  %v169_v57 = vld [vmem:[%s5192_s1 + $0x130] sm:$0xff]  ;;  %v172_v58 = vld [vmem:[%s5192_s1 + $0x148] sm:$0xff]  ;;  %v175_v60 = vld [vmem:[%s5192_s1 + $0x160] sm:$0xff] }
  0x1c   :  { %v2614_v59 = vpack.c.bf16 %v172_v58, %v169_v57  ;;  %v417_v61 = vld [vmem:[%s5194_s3] sm:$0xff] }
  0x1d   :  { %v176_v3 = vld [vmem:[%s5193_s2] sm:$0x7] }
  0x1e   :  { %2590 = vmatpush1.bf16.msra.mxu1 %v2589_v9  ;;  %v181_v5 = vrot.slane %v176_v3, %v3537_v2  ;;  %v185_v7 = vrot.slane %v176_v3, %v184_v4 }
  0x1f   :  { %2592 = vmatprep.subr.bf16.mxu1 %v2591_v10 }
  0x22   :  { %2594 = vmatpush1.bf16.msra.mxu1 %v2593_v13 }
  0x23   :  { %231 = vmatprep.subr.mxu1 %v174_v14 }
  0x26   :  { %232 = vmatpush1.msra.mxu1 %v173_v15 }
  0x27   :  { %2595 = vmatprep.subr.bf16.mxu1 %v3233_v16 }
  0x77   :  { %v56_v17 = vpop.permute.xlu0 %55  ;;  %v90_v18 = vpop.permute.xlu1 %89 }
  0x78   :  { %v116_v21 = vsel %vm115_vm4, %v3305_v0, %v56_v17 }
  0x7b   :  { %v73_v22 = vpop.permute.xlu0 %72  ;;  %v107_v23 = vpop.permute.xlu1 %106 }
  0x7c   :  { %v120_v24 = vsel %vm119_vm5, %v116_v21, %v73_v22 }
  0x7d   :  { %v124_v26 = vsel %vm123_vm6, %v120_v24, %v90_v18 }
  0x7e   :  { %v128_v29 = vsel %vm127_vm7, %v124_v26, %v107_v23 }
  0x7f   :  { %2277 = vmatmul.mubr.msk.f32.vlgmr.msra.gmra.mrb[0].mxu1 %vm193_vm8, %v128_v29  ;;  %v58_v0 = vpop.permute.xlu0 %57  ;;  %v75_v30 = vpop.permute.xlu1 %74 }
  0x80   :  { %2597 = vmatpush3.bf16.msra.mxu1 %v2596_v25  ;;  %v117_v31 = vsel %vm115_vm4, %v3310_v1, %v58_v0  ;;  %273 = vmatprep.mubr.f32.mxu1 %v3232_v43 }
  0x81   :  { %2598 = vmatprep.subr.bf16.mxu1 %v3233_v16  ;;  %v121_v35 = vsel %vm119_vm5, %v117_v31, %v75_v30 }
  0x83   :  { %v92_v36 = vpop.permute.xlu0 %91  ;;  %v109_v37 = vpop.permute.xlu1 %108 }
  0x84   :  { %2600 = vmatpush3.bf16.msra.mxu1 %v2599_v32  ;;  %v125_v1 = vsel %vm123_vm6, %v121_v35, %v92_v36 }
  0x85   :  { %v129_v39 = vsel %vm127_vm7, %v125_v1, %v109_v37  ;;  %2601 = vmatprep.subr.bf16.mxu1 %v3233_v16  ;;  %v188_v1 = vsub.s32 2, %v3534_v63  ;;  %v1635_v63 = vld [vmem:[%s5198_s7 + $0x80] sm:$0xff] }
  0x86   :  { %2278 = vmatmul.mubr.msk.f32.gmra.mrb[2].mxu1 %vm193_vm8, %v129_v39 }
  0x87   :  { %v60_v42 = vpop.permute.xlu0 %59  ;;  %v77_v44 = vpop.permute.xlu1 %76  ;;  %279 = vmatprep.mubr.f32.mxu1 %v3232_v43 }
  0x88   :  { %2603 = vmatpush3.bf16.msra.mxu1 %v2602_v38  ;;  %v118_v45 = vsel %vm115_vm4, %v3321_v8, %v60_v42  ;;  %v189_v42 = vrot.slane %v176_v3, %v188_v1  ;;  %v701_v1 = vld [vmem:[%s5195_s4 + $0xa8] sm:$0xff]  ;;  %vm1939_vm4 = vcmask 490496  }
  0x89   :  { %2604 = vmatprep.subr.bf16.mxu1 %v3233_v16  ;;  %v122_v49 = vsel %vm119_vm5, %v118_v45, %v77_v44 }
  0x8b   :  { %v94_v50 = vpop.permute.xlu0 %93  ;;  %v111_v51 = vpop.permute.xlu1 %110 }
  0x8c   :  { %2606 = vmatpush3.bf16.msra.mxu1 %v2605_v46  ;;  %v126_v52 = vsel %vm123_vm6, %v122_v49, %v94_v50 }
  0x8d   :  { %v130_v8 = vsel %vm127_vm7, %v126_v52, %v111_v51  ;;  %2607 = vmatprep.subr.bf16.mxu1 %v3233_v16 }
  0x8e   :  { %2279 = vmatmul.mubr.msk.f32.gmra.mrb[4].mxu1 %vm193_vm8, %v130_v8 }
  0x8f   :  { %2473 = vmatprep.mubr.msk.f32.mxu1 %vm3234_vm9, %v3232_v43 }
  0x90   :  { %2609 = vmatpush3.bf16.msra.mxu1 %v2608_v53  ;;  %v418_v53 = vld [vmem:[%s5194_s3 + $0x8] sm:$0xf] }
  0x91   :  { %2610 = vmatprep.subr.bf16.mxu1 %v3233_v16 }
  0x94   :  { %2612 = vmatpush3.bf16.msra.mxu1 %v2611_v56 }
  0x95   :  { %2613 = vmatprep.subr.bf16.mxu1 %v3233_v16 }
  0x98   :  { %2615 = vmatpush3.bf16.msra.mxu1 %v2614_v59 }
  0x99   :  { %2471 = vmatprep.subr.mxu1 %v3232_v43 }
  0x9c   :  { %2472 = vmatpush3.msra.mxu1 %v175_v60 }
  0x9d   :  { %2474 = vmatmul.mubr.msk.f32.vlgmr.msra.gmra.mrb[6].mxu1 %vm193_vm8, %v128_v29 }
  0x9e   :  { %2476 = vmatprep.mubr.msk.f32.mxu1 %vm3234_vm9, %v3232_v43 }
  0xa1   :  { %2477 = vmatmul.mubr.msk.f32.gmra.mrb[8].mxu1 %vm193_vm8, %v129_v39 }
  0xa2   :  { %2479 = vmatprep.mubr.msk.f32.mxu1 %vm3234_vm9, %v3232_v43 }
  0xa5   :  { %2480 = vmatmul.mubr.msk.f32.gmra.mrb[10].mxu1 %vm193_vm8, %v130_v8 }
  0xa6   :  { %2488 = vmatprep.mubr.msk.f32.mxu1 %vm419_vm10, %v417_v61 }
 0x152   :  { %v269_v6 = vpop.f32.mrb[0].mxu1 }
 0x153   :  { %v271_v9 = vpop.f32.mrb[1].mxu1  ;;  %v270_v10 = vadd.f32 %v269_v6, %v181_v5 }
 0x154   :  { %v272_v11 = vadd.f32 %v271_v9, %v185_v7  ;;  %v683_v9 = vld [vmem:[%s5195_s4 + $0x18] sm:$0xff] }
 0x155   :  { %v366_v13 = vmax.f32 %v270_v10, 0.0 }
 0x156   :  { %v367_v17 = vmax.f32 %v272_v11, 0.0  ;;  %v680_v11 = vld [vmem:[%s5195_s4] sm:$0xff] }
 0x157   :  { %v384_v21 = vrot.slane %v366_v13, 1 }
 0x158   :  { %v387_v23 = vrot.slane %v367_v17, 1 }
 0x159   :  { %v275_v12 = vpop.f32.mrb[2].mxu1 }
 0x15a   :  { %v276_v14 = vadd.f32 %v275_v12, %v181_v5  ;;  %v277_v15 = vpop.f32.mrb[3].mxu1  ;;  %v682_v12 = vld [vmem:[%s5195_s4 + $0x10] sm:$0xff] }
 0x15b   :  { %v278_v18 = vadd.f32 %v277_v15, %v185_v7 }
 0x15c   :  { %v369_v19 = vmax.f32 %v276_v14, 0.0  ;;  %v687_v14 = vld [vmem:[%s5195_s4 + $0x38] sm:$0xff] }
 0x15d   :  { %v370_v20 = vmax.f32 %v278_v18, 0.0 }
 0x15e   :  { %v385_v22 = vrot.slane %v369_v19, 1 }
 0x15f   :  { %v388_v24 = vrot.slane %v370_v20, 1 }
 0x160   :  { %v386_v25 = vsel %vm47_vm0, %v384_v21, %v385_v22  ;;  %v689_v21 = vld [vmem:[%s5195_s4 + $0x48] sm:$0xff] }
 0x161   :  { %v281_v26 = vpop.f32.mrb[4].mxu1  ;;  %v389_v27 = vsel %vm47_vm0, %v387_v23, %v388_v24  ;;  %v408_v28 = vmax.f32 %v366_v13, %v386_v25  ;;  %v685_v13 = vld [vmem:[%s5195_s4 + $0x28] sm:$0xff]  ;;  %v688_v25 = vld [vmem:[%s5195_s4 + $0x40] sm:$0xff] }
 0x162   :  { %v282_v29 = vadd.f32 %v281_v26, %v181_v5  ;;  %v283_v0 = vpop.f32.mrb[5].mxu1  ;;  %v409_v30 = vmax.f32 %v367_v17, %v389_v27  ;;  %v2626_v17 = vpack.c.bf16 %v682_v12, %v680_v11  ;;  %v2628_v18 = vpack.c.bf16 %v687_v14, %v685_v13  ;;  %v690_v26 = vld [vmem:[%s5195_s4 + $0x50] sm:$0xff]  ;;  %v693_v27 = vld [vmem:[%s5195_s4 + $0x68] sm:$0xff]  ;;  %v720_v13 = vld [vmem:[%s5195_s4 + $0x140] sm:$0xff] }
 0x163   :  { %v284_v31 = vadd.f32 %v283_v0, %v185_v7  ;;  %v681_v7 = vld [vmem:[%s5195_s4 + $0x8] sm:$0xff]  ;;  %v722_v14 = vld [vmem:[%s5195_s4 + $0x150] sm:$0xff] }
 0x164   :  { %v372_v32 = vmax.f32 %v282_v29, 0.0  ;;  %v2624_v15 = vpack.c.bf16 %v683_v9, %v681_v7  ;;  %v2634_v29 = vpack.c.bf16 %v690_v26, %v688_v25  ;;  %v718_v7 = vld [vmem:[%s5195_s4 + $0x130] sm:$0xff]  ;;  %v721_v9 = vld [vmem:[%s5195_s4 + $0x148] sm:$0xff]  ;;  %v728_v26 = vld [vmem:[%s5195_s4 + $0x180] sm:$0xff] }
 0x165   :  { %v373_v33 = vmax.f32 %v284_v31, 0.0  ;;  %v694_v31 = vld [vmem:[%s5195_s4 + $0x70] sm:$0xff] }
 0x166   :  { %v393_v34 = vrot.slane %v372_v32, 1 }
 0x167   :  { %v395_v35 = vrot.slane %v373_v33, 1 }
 0x168   :  { %v394_v36 = vsel %vm47_vm0, %v385_v22, %v393_v34  ;;  %v414_v46 = vmax.f32 %v372_v32, %v393_v34  ;;  %v691_v22 = vld [vmem:[%s5195_s4 + $0x58] sm:$0xff]  ;;  %v697_v32 = vld [vmem:[%s5195_s4 + $0x88] sm:$0xff] }
 0x169   :  { %v396_v37 = vsel %vm47_vm0, %v388_v24, %v395_v35  ;;  %v411_v38 = vmax.f32 %v369_v19, %v394_v36  ;;  %v415_v44 = vmax.f32 %v373_v33, %v395_v35  ;;  %v684_v19 = vld [vmem:[%s5195_s4 + $0x20] sm:$0xff]  ;;  %v2632_v24 = vpack.c.bf16 %v691_v22, %v689_v21  ;;  %v699_v33 = vld [vmem:[%s5195_s4 + $0x98] sm:$0xff]  ;;  %v726_v21 = vld [vmem:[%s5195_s4 + $0x170] sm:$0xff] }
 0x16a   :  { %v412_v39 = vmax.f32 %v370_v20, %v396_v37  ;;  %v686_v20 = vld [vmem:[%s5195_s4 + $0x30] sm:$0xff]  ;;  %v2640_v35 = vpack.c.bf16 %v699_v33, %v697_v32  ;;  %v696_v36 = vld [vmem:[%s5195_s4 + $0x80] sm:$0xff]  ;;  %v729_v22 = vld [vmem:[%s5195_s4 + $0x188] sm:$0xff] }
 0x16b   :  { %v2618_v40 = vpack.c.bf16 %v411_v38, %v408_v28  ;;  %v2630_v23 = vpack.c.bf16 %v686_v20, %v684_v19  ;;  %v695_v28 = vld [vmem:[%s5195_s4 + $0x78] sm:$0xff]  ;;  %v698_v37 = vld [vmem:[%s5195_s4 + $0x90] sm:$0xff]  ;;  %v724_v20 = vld [vmem:[%s5195_s4 + $0x160] sm:$0xff] }
 0x16c   :  { %v2616_v41 = vpack.c.bf16 %v412_v39, %v409_v30  ;;  %v2636_v0 = vpack.c.bf16 %v695_v28, %v693_v27  ;;  %v692_v30 = vld [vmem:[%s5195_s4 + $0x60] sm:$0xff]  ;;  %v703_v38 = vld [vmem:[%s5195_s4 + $0xb8] sm:$0xff]  ;;  %v2642_v39 = vpack.c.bf16 %v698_v37, %v696_v36  ;;  %v730_v27 = vld [vmem:[%s5195_s4 + $0x190] sm:$0xff] }
 0x16d   :  { %v2638_v34 = vpack.c.bf16 %v694_v31, %v692_v30  ;;  %v733_v28 = vld [vmem:[%s5195_s4 + $0x1a8] sm:$0xff]  ;;  %v732_v31 = vld [vmem:[%s5195_s4 + $0x1a0] sm:$0xff]  ;;  %v734_v32 = vld [vmem:[%s5195_s4 + $0x1b0] sm:$0xff] }
 0x16e   :  { %2617 = vmatprep.subr.bf16.mxu0 %v2616_v41  ;;  %v700_v41 = vld [vmem:[%s5195_s4 + $0xa0] sm:$0xff]  ;;  %v737_v33 = vld [vmem:[%s5195_s4 + $0x1c8] sm:$0xff] }
 0x16f   :  { %2619 = vmatpush1.bf16.msra.mxu0 %v2618_v40  ;;  %v2644_v40 = vpack.c.bf16 %v703_v38, %v701_v1  ;;  %v736_v37 = vld [vmem:[%s5195_s4 + $0x1c0] sm:$0xff]  ;;  %v738_v1 = vld [vmem:[%s5195_s4 + $0x1d0] sm:$0xff]  ;;  %v741_v38 = vld [vmem:[%s5195_s4 + $0x1e8] sm:$0xff] }
 0x170   :  { %v352_v45 = vpop.f32.mrb[6].mxu1  ;;  %2283 = vmatprep.subr.msk.mxu0 %vm47_vm0, %v415_v44  ;;  %v705_v44 = vld [vmem:[%s5195_s4 + $0xc8] sm:$0xff] }
 0x171   :  { %v353_v47 = vadd.f32 %v352_v45, %v189_v42  ;;  %v2475_v48 = vpop.f32.mrb[7].mxu1  ;;  %v707_v45 = vld [vmem:[%s5195_s4 + $0xd8] sm:$0xff] }
 0x172   :  { %v704_v48 = vld [vmem:[%s5195_s4 + $0xc0] sm:$0xff] }
 0x173   :  { %2284 = vmatpush1.msk.msra.mxu0 %vm47_vm0, %v414_v46  ;;  %v368_v50 = vmax.f32 %v353_v47, 0.0  ;;  %v2648_v47 = vpack.c.bf16 %v707_v45, %v705_v44  ;;  %v742_v44 = vld [vmem:[%s5195_s4 + $0x1f0] sm:$0xff] }
 0x174   :  { %v357_v49 = vpop.f32.mrb[8].mxu1  ;;  %2285 = vmatmul.mubr.msk.f32.vlgmr.msra.gmra.mrb[0].mxu0 %vm419_vm10, %v417_v61 }
 0x175   :  { %v358_v51 = vadd.f32 %v357_v49, %v189_v42  ;;  %v2478_v52 = vpop.f32.mrb[9].mxu1  ;;  %505 = vmatprep.mubr.f32.mxu0 %v3232_v43  ;;  %v390_v55 = vrot.slane %v368_v50, 1  ;;  %v706_v49 = vld [vmem:[%s5195_s4 + $0xd0] sm:$0xff] }
 0x176   :  { %v2650_v52 = vpack.c.bf16 %v706_v49, %v704_v48  ;;  %v744_v48 = vld [vmem:[%s5195_s4 + $0x200] sm:$0xff] }
 0x177   :  { %v371_v8 = vmax.f32 %v358_v51, 0.0  ;;  %v711_v51 = vld [vmem:[%s5195_s4 + $0xf8] sm:$0xff] }
 0x178   :  { %v362_v54 = vpop.f32.mrb[10].mxu1  ;;  %2286 = vmatmul.mubr.msk.f32.gmra.mrb[2].mxu0 %vm419_vm10, %v418_v53 }
 0x179   :  { %v391_v56 = vrot.slane %v371_v8, 1  ;;  %v363_v57 = vadd.f32 %v362_v54, %v189_v42  ;;  %v2481_v58 = vpop.f32.mrb[11].mxu1  ;;  %v702_v42 = vld [vmem:[%s5195_s4 + $0xb0] sm:$0xff] }
 0x17a   :  { %v2646_v46 = vpack.c.bf16 %v702_v42, %v700_v41  ;;  %v710_v54 = vld [vmem:[%s5195_s4 + $0xf0] sm:$0xff]  ;;  %v740_v42 = vld [vmem:[%s5195_s4 + $0x1e0] sm:$0xff] }
 0x17b   :  { %v374_v59 = vmax.f32 %v363_v57, 0.0  ;;  %v392_v60 = vsel %vm47_vm0, %v390_v55, %v391_v56  ;;  %v713_v55 = vld [vmem:[%s5195_s4 + $0x108] sm:$0xff]  ;;  %v2686_v45 = vpack.c.bf16 %v742_v44, %v740_v42  ;;  %v780_v44 = vld [vmem:[%s5195_s4 + $0x320] sm:$0xff] }
 0x17c   :  { %v410_v61 = vmax.f32 %v368_v50, %v392_v60  ;;  %v709_v50 = vld [vmem:[%s5195_s4 + $0xe8] sm:$0xff]  ;;  %v714_v60 = vld [vmem:[%s5195_s4 + $0x110] sm:$0xff] }
 0x17d   :  { %v397_v62 = vrot.slane %v374_v59, 1 }
 0x17f   :  { %v398_v3 = vsel %vm47_vm0, %v391_v56, %v397_v62  ;;  %v416_v10 = vmax.f32 %v374_v59, %v397_v62  ;;  %v715_v56 = vld [vmem:[%s5195_s4 + $0x118] sm:$0xff]  ;;  %v712_v59 = vld [vmem:[%s5195_s4 + $0x100] sm:$0xff] }
 0x180   :  { %v413_v5 = vmax.f32 %v371_v8, %v398_v3  ;;  %v708_v8 = vld [vmem:[%s5195_s4 + $0xe0] sm:$0xff]  ;;  %v2656_v58 = vpack.c.bf16 %v715_v56, %v713_v55  ;;  %v719_v62 = vld [vmem:[%s5195_s4 + $0x138] sm:$0xff]  ;;  %v2658_v3 = vpack.c.bf16 %v714_v60, %v712_v59  ;;  %v750_v55 = vld [vmem:[%s5195_s4 + $0x230] sm:$0xff] }
 0x181   :  { %v2654_v57 = vpack.c.bf16 %v710_v54, %v708_v8  ;;  %v748_v54 = vld [vmem:[%s5195_s4 + $0x220] sm:$0xff]  ;;  %v753_v56 = vld [vmem:[%s5195_s4 + $0x248] sm:$0xff] }
 0x182   :  { %v2620_v6 = vpack.c.bf16 %v413_v5, %v410_v61  ;;  %v717_v61 = vld [vmem:[%s5195_s4 + $0x128] sm:$0xff]  ;;  %v752_v60 = vld [vmem:[%s5195_s4 + $0x240] sm:$0xff] }
 0x183   :  { %v2660_v5 = vpack.c.bf16 %v719_v62, %v717_v61  ;;  %v754_v61 = vld [vmem:[%s5195_s4 + $0x250] sm:$0xff]  ;;  %v757_v62 = vld [vmem:[%s5195_s4 + $0x268] sm:$0xff] }
 0x184   :  { %2621 = vmatprep.subr.bf16.mxu1 %v2620_v6 }
 0x185   :  { %2623 = vmatpush3.bf16.msra.mxu1 %v2620_v6  ;;  %v716_v6 = vld [vmem:[%s5195_s4 + $0x120] sm:$0xff] }
 0x186   :  { %2486 = vmatprep.subr.msk.mxu1 %vm47_vm0, %v416_v10  ;;  %v2662_v11 = vpack.c.bf16 %v718_v7, %v716_v6  ;;  %v756_v7 = vld [vmem:[%s5195_s4 + $0x260] sm:$0xff] }
 0x189   :  { %2487 = vmatpush3.msk.msra.mxu1 %vm47_vm0, %v416_v10  ;;  %v723_v10 = vld [vmem:[%s5195_s4 + $0x158] sm:$0xff] }
 0x18a   :  { %2489 = vmatmul.mubr.msk.f32.vlgmr.msra.gmra.mrb[12].mxu1 %vm419_vm10, %v418_v53  ;;  %2625 = vmatprep.subr.bf16.mxu1 %v2624_v15  ;;  %v2652_v53 = vpack.c.bf16 %v711_v51, %v709_v50  ;;  %v2664_v12 = vpack.c.bf16 %v723_v10, %v721_v9  ;;  %v725_v15 = vld [vmem:[%s5195_s4 + $0x168] sm:$0xff]  ;;  %v746_v50 = vld [vmem:[%s5195_s4 + $0x210] sm:$0xff] }
 0x18b   :  { %2627 = vmatpush1.bf16.msra.mxu1 %v2626_v17  ;;  %v727_v17 = vld [vmem:[%s5195_s4 + $0x178] sm:$0xff]  ;;  %v749_v51 = vld [vmem:[%s5195_s4 + $0x228] sm:$0xff]  ;;  %v758_v9 = vld [vmem:[%s5195_s4 + $0x270] sm:$0xff] }
 0x18c   :  { %2629 = vmatprep.subr.bf16.mxu1 %v2628_v18  ;;  %v2666_v18 = vpack.c.bf16 %v722_v14, %v720_v13  ;;  %v2668_v19 = vpack.c.bf16 %v727_v17, %v725_v15  ;;  %v761_v10 = vld [vmem:[%s5195_s4 + $0x288] sm:$0xff]  ;;  %v760_v14 = vld [vmem:[%s5195_s4 + $0x280] sm:$0xff]  ;;  %v762_v15 = vld [vmem:[%s5195_s4 + $0x290] sm:$0xff] }
 0x18d   :  { %v765_v17 = vld [vmem:[%s5195_s4 + $0x2a8] sm:$0xff] }
 0x18f   :  { %2631 = vmatpush1.bf16.msra.mxu1 %v2630_v23  ;;  %v731_v23 = vld [vmem:[%s5195_s4 + $0x198] sm:$0xff] }
 0x190   :  { %2633 = vmatprep.subr.bf16.mxu1 %v2632_v24  ;;  %v2670_v24 = vpack.c.bf16 %v726_v21, %v724_v20  ;;  %v2672_v25 = vpack.c.bf16 %v731_v23, %v729_v22  ;;  %v764_v21 = vld [vmem:[%s5195_s4 + $0x2a0] sm:$0xff]  ;;  %v766_v22 = vld [vmem:[%s5195_s4 + $0x2b0] sm:$0xff]  ;;  %v769_v23 = vld [vmem:[%s5195_s4 + $0x2c8] sm:$0xff] }
 0x193   :  { %2635 = vmatpush1.bf16.msra.mxu1 %v2634_v29  ;;  %v735_v29 = vld [vmem:[%s5195_s4 + $0x1b8] sm:$0xff] }
 0x194   :  { %2637 = vmatprep.subr.bf16.mxu1 %v2636_v0  ;;  %v2674_v0 = vpack.c.bf16 %v730_v27, %v728_v26  ;;  %v2676_v30 = vpack.c.bf16 %v735_v29, %v733_v28  ;;  %v768_v27 = vld [vmem:[%s5195_s4 + $0x2c0] sm:$0xff]  ;;  %v770_v28 = vld [vmem:[%s5195_s4 + $0x2d0] sm:$0xff]  ;;  %v773_v29 = vld [vmem:[%s5195_s4 + $0x2e8] sm:$0xff] }
 0x197   :  { %2639 = vmatpush1.bf16.msra.mxu1 %v2638_v34  ;;  %v739_v34 = vld [vmem:[%s5195_s4 + $0x1d8] sm:$0xff] }
 0x198   :  { %2641 = vmatprep.subr.bf16.mxu1 %v2640_v35  ;;  %v2678_v35 = vpack.c.bf16 %v734_v32, %v732_v31  ;;  %v2680_v36 = vpack.c.bf16 %v739_v34, %v737_v33  ;;  %v772_v32 = vld [vmem:[%s5195_s4 + $0x2e0] sm:$0xff]  ;;  %v774_v33 = vld [vmem:[%s5195_s4 + $0x2f0] sm:$0xff]  ;;  %v777_v34 = vld [vmem:[%s5195_s4 + $0x308] sm:$0xff] }
 0x19b   :  { %2643 = vmatpush1.bf16.msra.mxu1 %v2642_v39  ;;  %v743_v39 = vld [vmem:[%s5195_s4 + $0x1f8] sm:$0xff] }
 0x19c   :  { %2645 = vmatprep.subr.bf16.mxu1 %v2644_v40  ;;  %v2682_v40 = vpack.c.bf16 %v738_v1, %v736_v37  ;;  %v2684_v41 = vpack.c.bf16 %v743_v39, %v741_v38  ;;  %v776_v1 = vld [vmem:[%s5195_s4 + $0x300] sm:$0xff]  ;;  %v778_v38 = vld [vmem:[%s5195_s4 + $0x310] sm:$0xff]  ;;  %v781_v39 = vld [vmem:[%s5195_s4 + $0x328] sm:$0xff] }
 0x19f   :  { %2647 = vmatpush1.bf16.msra.mxu1 %v2646_v46  ;;  %v745_v46 = vld [vmem:[%s5195_s4 + $0x208] sm:$0xff] }
 0x1a0   :  { %2649 = vmatprep.subr.bf16.mxu1 %v2648_v47  ;;  %v747_v47 = vld [vmem:[%s5195_s4 + $0x218] sm:$0xff] }
 0x1a1   :  { %v2688_v49 = vpack.c.bf16 %v747_v47, %v745_v46  ;;  %v785_v46 = vld [vmem:[%s5195_s4 + $0x348] sm:$0xff]  ;;  %v787_v47 = vld [vmem:[%s5195_s4 + $0x358] sm:$0xff] }
 0x1a3   :  { %2651 = vmatpush1.bf16.msra.mxu1 %v2650_v52  ;;  %v751_v52 = vld [vmem:[%s5195_s4 + $0x238] sm:$0xff]  ;;  %2689 = vmatprep.subr.bf16.mxu0 %v2688_v49  ;;  %v2728_v49 = vpack.c.bf16 %v787_v47, %v785_v46 }
 0x1a4   :  { %2653 = vmatprep.subr.bf16.mxu1 %v2652_v53  ;;  %v2690_v53 = vpack.c.bf16 %v746_v50, %v744_v48  ;;  %v2692_v8 = vpack.c.bf16 %v751_v52, %v749_v51  ;;  %v784_v50 = vld [vmem:[%s5195_s4 + $0x340] sm:$0xff]  ;;  %v786_v51 = vld [vmem:[%s5195_s4 + $0x350] sm:$0xff]  ;;  %v789_v52 = vld [vmem:[%s5195_s4 + $0x368] sm:$0xff] }
 0x1a6   :  { %2691 = vmatpush1.bf16.msra.mxu0 %v2690_v53  ;;  %v791_v53 = vld [vmem:[%s5195_s4 + $0x378] sm:$0xff] }
 0x1a7   :  { %2655 = vmatpush1.bf16.msra.mxu1 %v2654_v57  ;;  %v755_v57 = vld [vmem:[%s5195_s4 + $0x258] sm:$0xff]  ;;  %2693 = vmatprep.subr.bf16.mxu0 %v2692_v8  ;;  %v2730_v8 = vpack.c.bf16 %v786_v51, %v784_v50 }
 0x1a8   :  { %2657 = vmatprep.subr.bf16.mxu1 %v2656_v58  ;;  %v2694_v58 = vpack.c.bf16 %v750_v55, %v748_v54  ;;  %v2696_v59 = vpack.c.bf16 %v755_v57, %v753_v56  ;;  %v2732_v54 = vpack.c.bf16 %v791_v53, %v789_v52  ;;  %v788_v55 = vld [vmem:[%s5195_s4 + $0x360] sm:$0xff]  ;;  %v790_v56 = vld [vmem:[%s5195_s4 + $0x370] sm:$0xff]  ;;  %v793_v57 = vld [vmem:[%s5195_s4 + $0x388] sm:$0xff] }
 0x1aa   :  { %2695 = vmatpush1.bf16.msra.mxu0 %v2694_v58  ;;  %v795_v58 = vld [vmem:[%s5195_s4 + $0x398] sm:$0xff] }
 0x1ab   :  { %2659 = vmatpush1.bf16.msra.mxu1 %v2658_v3  ;;  %v759_v3 = vld [vmem:[%s5195_s4 + $0x278] sm:$0xff]  ;;  %2697 = vmatprep.subr.bf16.mxu0 %v2696_v59  ;;  %v2734_v59 = vpack.c.bf16 %v790_v56, %v788_v55 }
 0x1ac   :  { %2661 = vmatprep.subr.bf16.mxu1 %v2660_v5  ;;  %v2698_v5 = vpack.c.bf16 %v754_v61, %v752_v60  ;;  %v2700_v6 = vpack.c.bf16 %v759_v3, %v757_v62  ;;  %v2736_v60 = vpack.c.bf16 %v795_v58, %v793_v57  ;;  %v792_v61 = vld [vmem:[%s5195_s4 + $0x380] sm:$0xff]  ;;  %v794_v62 = vld [vmem:[%s5195_s4 + $0x390] sm:$0xff]  ;;  %v797_v3 = vld [vmem:[%s5195_s4 + $0x3a8] sm:$0xff] }
 0x1ae   :  { %2699 = vmatpush1.bf16.msra.mxu0 %v2698_v5  ;;  %v799_v5 = vld [vmem:[%s5195_s4 + $0x3b8] sm:$0xff] }
 0x1af   :  { %2663 = vmatpush1.bf16.msra.mxu1 %v2662_v11  ;;  %v763_v11 = vld [vmem:[%s5195_s4 + $0x298] sm:$0xff]  ;;  %2701 = vmatprep.subr.bf16.mxu0 %v2700_v6  ;;  %v2738_v6 = vpack.c.bf16 %v794_v62, %v792_v61 }
 0x1b0   :  { %2665 = vmatprep.subr.bf16.mxu1 %v2664_v12  ;;  %v2702_v12 = vpack.c.bf16 %v758_v9, %v756_v7  ;;  %v2704_v13 = vpack.c.bf16 %v763_v11, %v761_v10  ;;  %v2740_v7 = vpack.c.bf16 %v799_v5, %v797_v3  ;;  %v796_v9 = vld [vmem:[%s5195_s4 + $0x3a0] sm:$0xff]  ;;  %v798_v10 = vld [vmem:[%s5195_s4 + $0x3b0] sm:$0xff]  ;;  %v801_v11 = vld [vmem:[%s5195_s4 + $0x3c8] sm:$0xff] }
 0x1b2   :  { %2703 = vmatpush1.bf16.msra.mxu0 %v2702_v12  ;;  %v803_v12 = vld [vmem:[%s5195_s4 + $0x3d8] sm:$0xff] }
 0x1b3   :  { %2667 = vmatpush1.bf16.msra.mxu1 %v2666_v18  ;;  %v767_v18 = vld [vmem:[%s5195_s4 + $0x2b8] sm:$0xff]  ;;  %2705 = vmatprep.subr.bf16.mxu0 %v2704_v13  ;;  %v2742_v13 = vpack.c.bf16 %v798_v10, %v796_v9 }
 0x1b4   :  { %2669 = vmatprep.subr.bf16.mxu1 %v2668_v19  ;;  %v2706_v19 = vpack.c.bf16 %v762_v15, %v760_v14  ;;  %v2708_v20 = vpack.c.bf16 %v767_v18, %v765_v17  ;;  %v2744_v14 = vpack.c.bf16 %v803_v12, %v801_v11  ;;  %v800_v15 = vld [vmem:[%s5195_s4 + $0x3c0] sm:$0xff]  ;;  %v802_v17 = vld [vmem:[%s5195_s4 + $0x3d0] sm:$0xff]  ;;  %v805_v18 = vld [vmem:[%s5195_s4 + $0x3e8] sm:$0xff] }
 0x1b6   :  { %2707 = vmatpush1.bf16.msra.mxu0 %v2706_v19  ;;  %v807_v19 = vld [vmem:[%s5195_s4 + $0x3f8] sm:$0xff] }
 0x1b7   :  { %2671 = vmatpush1.bf16.msra.mxu1 %v2670_v24  ;;  %v771_v24 = vld [vmem:[%s5195_s4 + $0x2d8] sm:$0xff]  ;;  %2709 = vmatprep.subr.bf16.mxu0 %v2708_v20  ;;  %v2746_v20 = vpack.c.bf16 %v802_v17, %v800_v15  ;;  %v813_v17 = vld [vmem:[%s5195_s4 + $0x428] sm:$0xff] }
 0x1b8   :  { %2673 = vmatprep.subr.bf16.mxu1 %v2672_v25  ;;  %v2710_v25 = vpack.c.bf16 %v766_v22, %v764_v21  ;;  %v2712_v26 = vpack.c.bf16 %v771_v24, %v769_v23  ;;  %v2748_v21 = vpack.c.bf16 %v807_v19, %v805_v18  ;;  %v804_v22 = vld [vmem:[%s5195_s4 + $0x3e0] sm:$0xff]  ;;  %v806_v23 = vld [vmem:[%s5195_s4 + $0x3f0] sm:$0xff]  ;;  %v815_v18 = vld [vmem:[%s5195_s4 + $0x438] sm:$0xff] }
 0x1b9   :  { %v2750_v24 = vpack.c.bf16 %v806_v23, %v804_v22 }
 0x1ba   :  { %2711 = vmatpush1.bf16.msra.mxu0 %v2710_v25  ;;  %v809_v25 = vld [vmem:[%s5195_s4 + $0x408] sm:$0xff] }
 0x1bb   :  { %2675 = vmatpush1.bf16.msra.mxu1 %v2674_v0  ;;  %v775_v0 = vld [vmem:[%s5195_s4 + $0x2f8] sm:$0xff]  ;;  %2713 = vmatprep.subr.bf16.mxu0 %v2712_v26 }
 0x1bc   :  { %2677 = vmatprep.subr.bf16.mxu1 %v2676_v30  ;;  %v2714_v30 = vpack.c.bf16 %v770_v28, %v768_v27  ;;  %v2716_v31 = vpack.c.bf16 %v775_v0, %v773_v29  ;;  %v811_v26 = vld [vmem:[%s5195_s4 + $0x418] sm:$0xff] }
 0x1bd   :  { %v2752_v27 = vpack.c.bf16 %v811_v26, %v809_v25  ;;  %v812_v25 = vld [vmem:[%s5195_s4 + $0x420] sm:$0xff]  ;;  %v814_v26 = vld [vmem:[%s5195_s4 + $0x430] sm:$0xff] }
 0x1be   :  { %2715 = vmatpush1.bf16.msra.mxu0 %v2714_v30 }
 0x1bf   :  { %2679 = vmatpush1.bf16.msra.mxu1 %v2678_v35  ;;  %v779_v35 = vld [vmem:[%s5195_s4 + $0x318] sm:$0xff]  ;;  %2717 = vmatprep.subr.bf16.mxu0 %v2716_v31 }
 0x1c0   :  { %2681 = vmatprep.subr.bf16.mxu1 %v2680_v36  ;;  %v2718_v36 = vpack.c.bf16 %v774_v33, %v772_v32  ;;  %v2720_v37 = vpack.c.bf16 %v779_v35, %v777_v34 }
 0x1c2   :  { %2719 = vmatpush1.bf16.msra.mxu0 %v2718_v36 }
 0x1c3   :  { %2683 = vmatpush1.bf16.msra.mxu1 %v2682_v40  ;;  %v783_v40 = vld [vmem:[%s5195_s4 + $0x338] sm:$0xff]  ;;  %2721 = vmatprep.subr.bf16.mxu0 %v2720_v37 }
 0x1c4   :  { %2685 = vmatprep.subr.bf16.mxu1 %v2684_v41  ;;  %v2722_v41 = vpack.c.bf16 %v778_v38, %v776_v1  ;;  %v2724_v42 = vpack.c.bf16 %v783_v40, %v781_v39 }
 0x1c6   :  { %2723 = vmatpush1.bf16.msra.mxu0 %v2722_v41 }
 0x1c7   :  { %2687 = vmatpush1.bf16.msra.mxu1 %v2686_v45  ;;  %v782_v45 = vld [vmem:[%s5195_s4 + $0x330] sm:$0xff]  ;;  %2725 = vmatprep.subr.bf16.mxu0 %v2724_v42 }
 0x1c8   :  { %v2726_v48 = vpack.c.bf16 %v782_v45, %v780_v44 }
 0x1ca   :  { %2727 = vmatpush1.bf16.msra.mxu0 %v2726_v48 }
 0x1cb   :  { %2729 = vmatprep.subr.bf16.mxu0 %v2728_v49 }
 0x1ce   :  { %2731 = vmatpush1.bf16.msra.mxu0 %v2730_v8 }
 0x1cf   :  { %2733 = vmatprep.subr.bf16.mxu0 %v2732_v54 }
 0x1d2   :  { %2735 = vmatpush1.bf16.msra.mxu0 %v2734_v59 }
 0x1d3   :  { %2737 = vmatprep.subr.bf16.mxu0 %v2736_v60 }
 0x1d6   :  { %2739 = vmatpush1.bf16.msra.mxu0 %v2738_v6 }
 0x1d7   :  { %2741 = vmatprep.subr.bf16.mxu0 %v2740_v7 }
 0x1da   :  { %2743 = vmatpush1.bf16.msra.mxu0 %v2742_v13  ;;  %v808_v13 = vld [vmem:[%s5195_s4 + $0x400] sm:$0xff] }
 0x1db   :  { %2745 = vmatprep.subr.bf16.mxu0 %v2744_v14  ;;  %v810_v14 = vld [vmem:[%s5195_s4 + $0x410] sm:$0xff] }
 0x1de   :  { %2747 = vmatpush1.bf16.msra.mxu0 %v2746_v20 }
 0x1df   :  { %2749 = vmatprep.subr.bf16.mxu0 %v2748_v21  ;;  %v2754_v21 = vpack.c.bf16 %v810_v14, %v808_v13  ;;  %v838_v13 = vld [vmem:[%s5195_s4 + $0x4f0] sm:$0xff] }
 0x1e2   :  { %2751 = vmatpush1.bf16.msra.mxu0 %v2750_v24  ;;  %v2756_v24 = vpack.c.bf16 %v815_v18, %v813_v17  ;;  %v843_v17 = vld [vmem:[%s5195_s4 + $0x518] sm:$0xff] }
 0x1e3   :  { %2753 = vmatprep.subr.bf16.mxu0 %v2752_v27 }
 0x247   :  { %v501_v28 = vpop.f32.mrb[0].mxu0 }
 0x248   :  { %v503_v29 = vpop.f32.mrb[1].mxu0  ;;  %v593_v0 = vrot.slane %v501_v28, 1  ;;  %v614_v30 = vrot.slane %v501_v28, 2  ;;  %v636_v31 = vrot.slane %v501_v28, 3  ;;  %v657_v32 = vrot.slane %v501_v28, 4 }
 0x249   :  { %1141 = vmatprep.mubr.f32.mxu1 %v503_v29  ;;  %v596_v33 = vrot.slane %v503_v29, 1  ;;  %v617_v34 = vrot.slane %v503_v29, 2  ;;  %v639_v35 = vrot.slane %v503_v29, 3  ;;  %v660_v37 = vrot.slane %v503_v29, 4  ;;  %v819_v29 = vld [vmem:[%s5195_s4 + $0x458] sm:$0xff] }
 0x24a   :  { %1142 = vmatmul.mubr.f32.vlgmr.msra.gmra.mrb[14].mxu1 %v501_v28  ;;  %v817_v28 = vld [vmem:[%s5195_s4 + $0x448] sm:$0xff] }
 0x24b   :  { %v507_v36 = vpop.f32.mrb[2].mxu0  ;;  %1588 = vmatprep.mubr.f32.mxu1 %v3232_v43 }
 0x24c   :  { %v594_v1 = vrot.slane %v507_v36, 1  ;;  %v615_v38 = vrot.slane %v507_v36, 2  ;;  %v637_v39 = vrot.slane %v507_v36, 3  ;;  %v658_v40 = vrot.slane %v507_v36, 4  ;;  %v509_v41 = vpop.f32.mrb[3].mxu0  ;;  %v821_v36 = vld [vmem:[%s5195_s4 + $0x468] sm:$0xff] }
 0x24d   :  { %v597_v42 = vrot.slane %v509_v41, 1  ;;  %v618_v44 = vrot.slane %v509_v41, 2  ;;  %v640_v45 = vrot.slane %v509_v41, 3  ;;  %v661_v46 = vrot.slane %v509_v41, 4  ;;  %v825_v41 = vld [vmem:[%s5195_s4 + $0x488] sm:$0xff] }
 0x24e   :  { %v595_v47 = vsel %vm47_vm0, %v593_v0, %v594_v1  ;;  %v616_v48 = vsel %vm64_vm2, %v614_v30, %v615_v38  ;;  %v638_v49 = vsel %vm81_vm1, %v636_v31, %v637_v39  ;;  %v659_v50 = vsel %vm98_vm3, %v657_v32, %v658_v40  ;;  %v820_v39 = vld [vmem:[%s5195_s4 + $0x460] sm:$0xff]  ;;  %v822_v40 = vld [vmem:[%s5195_s4 + $0x470] sm:$0xff] }
 0x24f   :  { %v598_v51 = vsel %vm47_vm0, %v596_v33, %v597_v42  ;;  %v619_v52 = vsel %vm64_vm2, %v617_v34, %v618_v44  ;;  %v641_v53 = vsel %vm81_vm1, %v639_v35, %v640_v45  ;;  %v662_v8 = vsel %vm98_vm3, %v660_v37, %v661_v46  ;;  %v816_v34 = vld [vmem:[%s5195_s4 + $0x440] sm:$0xff]  ;;  %v818_v35 = vld [vmem:[%s5195_s4 + $0x450] sm:$0xff]  ;;  %v823_v37 = vld [vmem:[%s5195_s4 + $0x478] sm:$0xff] }
 0x250   :  { %v3189_v54 = vpack.i.bf16 %v598_v51, %v595_v47  ;;  %v3194_v55 = vpack.i.bf16 %v619_v52, %v616_v48  ;;  %v2758_v31 = vpack.c.bf16 %v814_v26, %v812_v25  ;;  %v2760_v33 = vpack.c.bf16 %v819_v29, %v817_v28  ;;  %v827_v42 = vld [vmem:[%s5195_s4 + $0x498] sm:$0xff]  ;;  %v824_v46 = vld [vmem:[%s5195_s4 + $0x480] sm:$0xff]  ;;  %v826_v47 = vld [vmem:[%s5195_s4 + $0x490] sm:$0xff] }
 0x251   :  { %v2762_v1 = vpack.c.bf16 %v818_v35, %v816_v34  ;;  %v2764_v38 = vpack.c.bf16 %v823_v37, %v821_v36  ;;  %v2766_v44 = vpack.c.bf16 %v822_v40, %v820_v39  ;;  %v2768_v45 = vpack.c.bf16 %v827_v42, %v825_v41  ;;  %v844_v26 = vld [vmem:[%s5195_s4 + $0x520] sm:$0xff]  ;;  %v846_v28 = vld [vmem:[%s5195_s4 + $0x530] sm:$0xff]  ;;  %v849_v29 = vld [vmem:[%s5195_s4 + $0x548] sm:$0xff] }
 0x252   :  { %3190 = vrot.lane.b32.xlu0 %v3189_v54, %s3235_s26  ;;  %v2770_v52 = vpack.c.bf16 %v826_v47, %v824_v46  ;;  %v830_v54 = vld [vmem:[%s5195_s4 + $0x4b0] sm:$0xff]  ;;  %v853_v35 = vld [vmem:[%s5195_s4 + $0x568] sm:$0xff]  ;;  %v855_v36 = vld [vmem:[%s5195_s4 + $0x578] sm:$0xff] }
 0x253   :  { %v850_v34 = vld [vmem:[%s5195_s4 + $0x550] sm:$0xff]  ;;  %v857_v40 = vld [vmem:[%s5195_s4 + $0x588] sm:$0xff]  ;;  %v859_v41 = vld [vmem:[%s5195_s4 + $0x598] sm:$0xff] }
 0x254   :  { %v854_v39 = vld [vmem:[%s5195_s4 + $0x570] sm:$0xff]  ;;  %v861_v47 = vld [vmem:[%s5195_s4 + $0x5a8] sm:$0xff] }
 0x255   :  { %v858_v46 = vld [vmem:[%s5195_s4 + $0x590] sm:$0xff] }
 0x256   :  { %3195 = vrot.lane.b32.xlu0 %v3194_v55, %s3236_s27 }
 0x25a   :  { %645 = vrot.lane.b32.xlu0 %v638_v49, %s3237_s28  ;;  %v829_v49 = vld [vmem:[%s5195_s4 + $0x4a8] sm:$0xff] }
 0x25d   :  { %v2490_v56 = vpop.f32.mrb[12].mxu1 }
 0x25e   :  { %v600_v57 = vrot.slane %v2490_v56, 1  ;;  %v621_v58 = vrot.slane %v2490_v56, 2  ;;  %v643_v59 = vrot.slane %v2490_v56, 3  ;;  %v664_v60 = vrot.slane %v2490_v56, 4  ;;  %v578_v61 = vpop.f32.mrb[13].mxu1  ;;  %666 = vrot.lane.b32.xlu0 %v659_v50, %s3230_s18  ;;  %v831_v50 = vld [vmem:[%s5195_s4 + $0x4b8] sm:$0xff] }
 0x25f   :  { %v642_v62 = vrot.slane %v578_v61, 3  ;;  %v599_v3 = vrot.slane %v578_v61, 1  ;;  %v620_v5 = vrot.slane %v578_v61, 2  ;;  %v663_v6 = vrot.slane %v578_v61, 4  ;;  %v833_v56 = vld [vmem:[%s5195_s4 + $0x4c8] sm:$0xff] }
 0x261   :  { %v601_v7 = vsel %vm47_vm0, %v599_v3, %v600_v57  ;;  %v622_v9 = vsel %vm64_vm2, %v620_v5, %v621_v58  ;;  %v644_v10 = vsel %vm81_vm1, %v642_v62, %v643_v59  ;;  %v665_v11 = vsel %vm98_vm3, %v663_v6, %v664_v60  ;;  %v835_v57 = vld [vmem:[%s5195_s4 + $0x4d8] sm:$0xff]  ;;  %v834_v62 = vld [vmem:[%s5195_s4 + $0x4d0] sm:$0xff]  ;;  %v837_v5 = vld [vmem:[%s5195_s4 + $0x4e8] sm:$0xff] }
 0x262   :  { %606 = vrot.lane.b32.xlu1 %v601_v7, %s3235_s26  ;;  %v3199_v12 = vpack.i.bf16 %v644_v10, %v641_v53  ;;  %670 = vrot.lane.b32.xlu0 %v665_v11, %s3230_s18  ;;  %v2772_v53 = vpack.c.bf16 %v831_v50, %v829_v49  ;;  %v2776_v60 = vpack.c.bf16 %v835_v57, %v833_v56  ;;  %v839_v6 = vld [vmem:[%s5195_s4 + $0x4f8] sm:$0xff]  ;;  %vm4763_vm1 = vmpackc.low %vm98_vm3, %vm3238_vm15  ;;  %vm1514_vm2 = vcmask 56320   ;;  %s3204_s26 = scalar_lea.vmem %s2270_s25, 32 }
 0x263   :  { %v2780_v11 = vpack.c.bf16 %v839_v6, %v837_v5  ;;  %vm1716_vm3 = vcmask 654336   ;;  %p3205_p0 = scmp.ne.s32.totalorder %s2270_s25, %s3204_s26  ;;  %p3210_p2 = scmp.lt.s32.totalorder %s3204_s26, %s3204_s26 }
 0x265   :  { %p3211_p3 = por %p3210_p2, %p3209_p1 }
 0x266   :  { %627 = vrot.lane.b32.xlu1 %v622_v9, %s3236_s27 }
 0x267   :  { %p3212_p4 = pnand %p3211_p3, %p3205_p0 }
 0x26a   :  { %3200 = vrot.lane.b32.xlu1 %v3199_v12, %s3237_s28  ;;  %v836_v12 = vld [vmem:[%s5195_s4 + $0x4e0] sm:$0xff] }
 0x26b   :  { %v2782_v18 = vpack.c.bf16 %v838_v13, %v836_v12  ;;  %v873_v12 = vld [vmem:[%s5195_s4 + $0x608] sm:$0xff]  ;;  %v875_v13 = vld [vmem:[%s5195_s4 + $0x618] sm:$0xff] }
 0x26e   :  { %668 = vrot.lane.b32.xlu1 %v662_v8, %s3230_s18  ;;  %v828_v8 = vld [vmem:[%s5195_s4 + $0x4a0] sm:$0xff] }
 0x26f   :  { %v2774_v59 = vpack.c.bf16 %v830_v54, %v828_v8  ;;  %v865_v8 = vld [vmem:[%s5195_s4 + $0x5c8] sm:$0xff]  ;;  %v867_v54 = vld [vmem:[%s5195_s4 + $0x5d8] sm:$0xff] }
 0x270   :  { %v2808_v57 = vpack.c.bf16 %v867_v54, %v865_v8  ;;  %v898_v8 = vld [vmem:[%s5195_s4 + $0x6d0] sm:$0xff]  ;;  %v901_v54 = vld [vmem:[%s5195_s4 + $0x6e8] sm:$0xff] }
 0x2c4   :  { %v3191_v15 = vpop.permute.xlu0 %3190 }
 0x2c5   :  { %v3193_v19 = vunpack.i.h.bf16 %v3191_v15  ;;  %v3192_v20 = vunpack.i.l.bf16 %v3191_v15  ;;  %v841_v15 = vld [vmem:[%s5195_s4 + $0x508] sm:$0xff] }
 0x2c7   :  { %v609_v22 = vsel %vm608_vm11, %v3192_v20, %v3193_v19  ;;  %v676_v23 = vsel %vm608_vm11, %v578_v61, %v3192_v20  ;;  %v832_v61 = vld [vmem:[%s5195_s4 + $0x4c0] sm:$0xff] }
 0x2c8   :  { %v3990_v27 = vpop.permute.xlu0 %3195  ;;  %1212 = vmatprep.mubr.f32.mxu0 %v609_v22  ;;  %v2778_v10 = vpack.c.bf16 %v834_v62, %v832_v61  ;;  %v840_v20 = vld [vmem:[%s5195_s4 + $0x500] sm:$0xff]  ;;  %v845_v22 = vld [vmem:[%s5195_s4 + $0x528] sm:$0xff]  ;;  %v871_v62 = vld [vmem:[%s5195_s4 + $0x5f8] sm:$0xff] }
 0x2c9   :  { %v3198_v0 = vunpack.i.h.bf16 %v3990_v27  ;;  %v3197_v30 = vunpack.i.l.bf16 %v3990_v27  ;;  %1213 = vmatmul.mubr.f32.vlgmr.msra.gmra.mrb[4].mxu0 %v676_v23  ;;  %v847_v23 = vld [vmem:[%s5195_s4 + $0x538] sm:$0xff]  ;;  %v869_v61 = vld [vmem:[%s5195_s4 + $0x5e8] sm:$0xff] }
 0x2ca   :  { %2755 = vmatpush1.bf16.msra.mxu0 %v2754_v21  ;;  %v842_v21 = vld [vmem:[%s5195_s4 + $0x510] sm:$0xff]  ;;  %v2788_v25 = vpack.c.bf16 %v847_v23, %v845_v22  ;;  %v2812_v6 = vpack.c.bf16 %v871_v62, %v869_v61  ;;  %v900_v62 = vld [vmem:[%s5195_s4 + $0x6e0] sm:$0xff] }
 0x2cb   :  { %2757 = vmatprep.subr.bf16.mxu0 %v2756_v24  ;;  %v630_v32 = vsel %vm629_vm12, %v3197_v30, %v3198_v0  ;;  %v2786_v24 = vpack.c.bf16 %v842_v21, %v840_v20  ;;  %v877_v20 = vld [vmem:[%s5195_s4 + $0x628] sm:$0xff]  ;;  %v879_v21 = vld [vmem:[%s5195_s4 + $0x638] sm:$0xff] }
 0x2cc   :  { %1283 = vmatprep.mubr.f32.mxu0 %v630_v32  ;;  %v4075_v9 = vpop.permute.xlu0 %645  ;;  %v2820_v23 = vpack.c.bf16 %v879_v21, %v877_v20  ;;  %v908_v21 = vld [vmem:[%s5195_s4 + $0x720] sm:$0xff] }
 0x2ce   :  { %2759 = vmatpush1.bf16.msra.mxu0 %v2758_v31  ;;  %v2790_v31 = vpack.c.bf16 %v846_v28, %v844_v26  ;;  %v881_v28 = vld [vmem:[%s5195_s4 + $0x648] sm:$0xff] }
 0x2cf   :  { %2761 = vmatprep.subr.bf16.mxu0 %v2760_v33  ;;  %v848_v33 = vld [vmem:[%s5195_s4 + $0x540] sm:$0xff] }
 0x2d0   :  { %v2794_v37 = vpack.c.bf16 %v850_v34, %v848_v33  ;;  %v884_v34 = vld [vmem:[%s5195_s4 + $0x660] sm:$0xff] }
 0x2d2   :  { %2763 = vmatpush1.bf16.msra.mxu0 %v2762_v1  ;;  %v2796_v1 = vpack.c.bf16 %v855_v36, %v853_v35  ;;  %v886_v35 = vld [vmem:[%s5195_s4 + $0x670] sm:$0xff]  ;;  %v889_v36 = vld [vmem:[%s5195_s4 + $0x688] sm:$0xff] }
 0x2d3   :  { %2765 = vmatprep.subr.bf16.mxu0 %v2764_v38  ;;  %v852_v38 = vld [vmem:[%s5195_s4 + $0x560] sm:$0xff] }
 0x2d4   :  { %v607_v48 = vpop.permute.xlu1 %606  ;;  %v2798_v42 = vpack.c.bf16 %v854_v39, %v852_v38  ;;  %v888_v39 = vld [vmem:[%s5195_s4 + $0x680] sm:$0xff] }
 0x2d5   :  { %v4040_v51 = vsel %vm608_vm11, %v3193_v19, %v607_v48  ;;  %v2784_v19 = vpack.c.bf16 %v843_v17, %v841_v15  ;;  %v863_v48 = vld [vmem:[%s5195_s4 + $0x5b8] sm:$0xff]  ;;  %v2816_v17 = vpack.c.bf16 %v875_v13, %v873_v12  ;;  %v904_v13 = vld [vmem:[%s5195_s4 + $0x700] sm:$0xff] }
 0x2d6   :  { %2767 = vmatpush1.bf16.msra.mxu0 %v2766_v44  ;;  %v2800_v44 = vpack.c.bf16 %v859_v41, %v857_v40  ;;  %v2804_v50 = vpack.c.bf16 %v863_v48, %v861_v47  ;;  %v677_v26 = vsel %vm629_vm12, %v4040_v51, %v3197_v30  ;;  %v880_v30 = vld [vmem:[%s5195_s4 + $0x640] sm:$0xff]  ;;  %v882_v51 = vld [vmem:[%s5195_s4 + $0x650] sm:$0xff]  ;;  %v893_v41 = vld [vmem:[%s5195_s4 + $0x6a8] sm:$0xff] }
 0x2d7   :  { %2769 = vmatprep.subr.bf16.mxu0 %v2768_v45  ;;  %v856_v45 = vld [vmem:[%s5195_s4 + $0x580] sm:$0xff]  ;;  %v890_v40 = vld [vmem:[%s5195_s4 + $0x690] sm:$0xff]  ;;  %v897_v48 = vld [vmem:[%s5195_s4 + $0x6c8] sm:$0xff] }
 0x2d8   :  { %v4048_v55 = vpop.permute.xlu1 %627  ;;  %v2802_v49 = vpack.c.bf16 %v858_v46, %v856_v45  ;;  %v892_v46 = vld [vmem:[%s5195_s4 + $0x6a0] sm:$0xff]  ;;  %v894_v47 = vld [vmem:[%s5195_s4 + $0x6b0] sm:$0xff] }
 0x2d9   :  { %v4058_v58 = vsel %vm629_vm12, %v3198_v0, %v4048_v55  ;;  %v851_v0 = vld [vmem:[%s5195_s4 + $0x558] sm:$0xff] }
 0x2da   :  { %2771 = vmatpush1.bf16.msra.mxu0 %v2770_v52  ;;  %v2792_v32 = vpack.c.bf16 %v851_v0, %v849_v29  ;;  %v860_v52 = vld [vmem:[%s5195_s4 + $0x5a0] sm:$0xff]  ;;  %v883_v29 = vld [vmem:[%s5195_s4 + $0x658] sm:$0xff]  ;;  %v678_v0 = vsel %vm651_vm13, %v4048_v55, %v4075_v9 }
 0x2db   :  { %2773 = vmatprep.subr.bf16.mxu0 %v2772_v53  ;;  %v862_v53 = vld [vmem:[%s5195_s4 + $0x5b0] sm:$0xff]  ;;  %v2824_v27 = vpack.c.bf16 %v883_v29, %v881_v28  ;;  %v887_v55 = vld [vmem:[%s5195_s4 + $0x678] sm:$0xff]  ;;  %v912_v28 = vld [vmem:[%s5195_s4 + $0x740] sm:$0xff] }
 0x2dc   :  { %v4066_v3 = vpop.permute.xlu1 %3200  ;;  %v2806_v56 = vpack.c.bf16 %v862_v53, %v860_v52  ;;  %v896_v53 = vld [vmem:[%s5195_s4 + $0x6c0] sm:$0xff]  ;;  %v914_v29 = vld [vmem:[%s5195_s4 + $0x750] sm:$0xff] }
 0x2dd   :  { %v3202_v7 = vunpack.i.l.bf16 %v4066_v3 }
 0x2de   :  { %2775 = vmatpush1.bf16.msra.mxu0 %v2774_v59  ;;  %v864_v59 = vld [vmem:[%s5195_s4 + $0x5c0] sm:$0xff] }
 0x2df   :  { %2777 = vmatprep.subr.bf16.mxu0 %v2776_v60  ;;  %v4087_v14 = vsel %vm651_vm13, %v4075_v9, %v3202_v7  ;;  %v866_v60 = vld [vmem:[%s5195_s4 + $0x5d0] sm:$0xff]  ;;  %v2826_v9 = vpack.c.bf16 %v882_v51, %v880_v30  ;;  %v916_v51 = vld [vmem:[%s5195_s4 + $0x760] sm:$0xff] }
 0x2e0   :  { %v2810_v5 = vpack.c.bf16 %v866_v60, %v864_v59  ;;  %v2842_v60 = vpack.c.bf16 %v898_v8, %v896_v53  ;;  %v932_v8 = vld [vmem:[%s5195_s4 + $0x7e0] sm:$0xff] }
 0x2e2   :  { %2779 = vmatpush1.bf16.msra.mxu0 %v2778_v10  ;;  %v868_v10 = vld [vmem:[%s5195_s4 + $0x5e0] sm:$0xff] }
 0x2e3   :  { %2781 = vmatprep.subr.bf16.mxu0 %v2780_v11  ;;  %v870_v11 = vld [vmem:[%s5195_s4 + $0x5f0] sm:$0xff] }
 0x2e4   :  { %v2814_v15 = vpack.c.bf16 %v870_v11, %v868_v10  ;;  %v907_v10 = vld [vmem:[%s5195_s4 + $0x718] sm:$0xff] }
 0x2e6   :  { %2783 = vmatpush1.bf16.msra.mxu0 %v2782_v18  ;;  %v872_v18 = vld [vmem:[%s5195_s4 + $0x600] sm:$0xff] }
 0x2e7   :  { %2785 = vmatprep.subr.bf16.mxu0 %v2784_v19  ;;  %v874_v19 = vld [vmem:[%s5195_s4 + $0x610] sm:$0xff] }
 0x2e8   :  { %v2818_v22 = vpack.c.bf16 %v874_v19, %v872_v18  ;;  %v911_v18 = vld [vmem:[%s5195_s4 + $0x738] sm:$0xff] }
 0x2ea   :  { %2787 = vmatpush1.bf16.msra.mxu0 %v2786_v24  ;;  %v876_v24 = vld [vmem:[%s5195_s4 + $0x620] sm:$0xff] }
 0x2eb   :  { %2789 = vmatprep.subr.bf16.mxu0 %v2788_v25  ;;  %v878_v25 = vld [vmem:[%s5195_s4 + $0x630] sm:$0xff] }
 0x2ee   :  { %2791 = vmatpush1.bf16.msra.mxu0 %v2790_v31  ;;  %v2822_v31 = vpack.c.bf16 %v878_v25, %v876_v24  ;;  %v915_v24 = vld [vmem:[%s5195_s4 + $0x758] sm:$0xff] }
 0x2ef   :  { %2793 = vmatprep.subr.bf16.mxu0 %v2792_v32  ;;  %v885_v32 = vld [vmem:[%s5195_s4 + $0x668] sm:$0xff] }
 0x2f0   :  { %v2828_v33 = vpack.c.bf16 %v887_v55, %v885_v32  ;;  %v918_v32 = vld [vmem:[%s5195_s4 + $0x770] sm:$0xff]  ;;  %v921_v55 = vld [vmem:[%s5195_s4 + $0x788] sm:$0xff] }
 0x2f2   :  { %2795 = vmatpush1.bf16.msra.mxu0 %v2794_v37  ;;  %v891_v37 = vld [vmem:[%s5195_s4 + $0x698] sm:$0xff] }
 0x2f3   :  { %2797 = vmatprep.subr.bf16.mxu0 %v2796_v1  ;;  %v2830_v1 = vpack.c.bf16 %v886_v35, %v884_v34  ;;  %v2832_v38 = vpack.c.bf16 %v891_v37, %v889_v36  ;;  %v920_v35 = vld [vmem:[%s5195_s4 + $0x780] sm:$0xff]  ;;  %v922_v36 = vld [vmem:[%s5195_s4 + $0x790] sm:$0xff]  ;;  %v925_v37 = vld [vmem:[%s5195_s4 + $0x7a8] sm:$0xff] }
 0x2f6   :  { %2799 = vmatpush1.bf16.msra.mxu0 %v2798_v42  ;;  %v895_v42 = vld [vmem:[%s5195_s4 + $0x6b8] sm:$0xff] }
 0x2f7   :  { %2801 = vmatprep.subr.bf16.mxu0 %v2800_v44  ;;  %v2834_v44 = vpack.c.bf16 %v890_v40, %v888_v39  ;;  %v2836_v45 = vpack.c.bf16 %v895_v42, %v893_v41  ;;  %v924_v40 = vld [vmem:[%s5195_s4 + $0x7a0] sm:$0xff]  ;;  %v926_v41 = vld [vmem:[%s5195_s4 + $0x7b0] sm:$0xff]  ;;  %v929_v42 = vld [vmem:[%s5195_s4 + $0x7c8] sm:$0xff] }
 0x2fa   :  { %2803 = vmatpush1.bf16.msra.mxu0 %v2802_v49  ;;  %v899_v49 = vld [vmem:[%s5195_s4 + $0x6d8] sm:$0xff] }
 0x2fb   :  { %2805 = vmatprep.subr.bf16.mxu0 %v2804_v50  ;;  %v2838_v50 = vpack.c.bf16 %v894_v47, %v892_v46  ;;  %v2840_v52 = vpack.c.bf16 %v899_v49, %v897_v48  ;;  %v928_v47 = vld [vmem:[%s5195_s4 + $0x7c0] sm:$0xff]  ;;  %v930_v48 = vld [vmem:[%s5195_s4 + $0x7d0] sm:$0xff]  ;;  %v933_v49 = vld [vmem:[%s5195_s4 + $0x7e8] sm:$0xff] }
 0x2fe   :  { %2807 = vmatpush1.bf16.msra.mxu0 %v2806_v56  ;;  %v903_v56 = vld [vmem:[%s5195_s4 + $0x6f8] sm:$0xff] }
 0x2ff   :  { %2809 = vmatprep.subr.bf16.mxu0 %v2808_v57  ;;  %v2844_v61 = vpack.c.bf16 %v903_v56, %v901_v54  ;;  %v934_v54 = vld [vmem:[%s5195_s4 + $0x7f0] sm:$0xff]  ;;  %v937_v56 = vld [vmem:[%s5195_s4 + $0x808] sm:$0xff] }
 0x302   :  { %2811 = vmatpush1.bf16.msra.mxu0 %v2810_v5  ;;  %v902_v5 = vld [vmem:[%s5195_s4 + $0x6f0] sm:$0xff] }
 0x303   :  { %2813 = vmatprep.subr.bf16.mxu0 %v2812_v6  ;;  %v905_v6 = vld [vmem:[%s5195_s4 + $0x708] sm:$0xff]  ;;  %v2846_v11 = vpack.c.bf16 %v902_v5, %v900_v62  ;;  %v2878_v62 = vpack.c.bf16 %v934_v54, %v932_v8 }
 0x304   :  { %v2848_v12 = vpack.c.bf16 %v907_v10, %v905_v6  ;;  %v936_v6 = vld [vmem:[%s5195_s4 + $0x800] sm:$0xff]  ;;  %v938_v10 = vld [vmem:[%s5195_s4 + $0x810] sm:$0xff] }
 0x306   :  { %2815 = vmatpush1.bf16.msra.mxu0 %v2814_v15  ;;  %v906_v15 = vld [vmem:[%s5195_s4 + $0x710] sm:$0xff] }
 0x307   :  { %2817 = vmatprep.subr.bf16.mxu0 %v2816_v17  ;;  %v909_v17 = vld [vmem:[%s5195_s4 + $0x728] sm:$0xff]  ;;  %v2850_v19 = vpack.c.bf16 %v906_v15, %v904_v13  ;;  %v2882_v13 = vpack.c.bf16 %v938_v10, %v936_v6  ;;  %v972_v10 = vld [vmem:[%s5195_s4 + $0x920] sm:$0xff] }
 0x308   :  { %v2852_v20 = vpack.c.bf16 %v911_v18, %v909_v17  ;;  %v940_v18 = vld [vmem:[%s5195_s4 + $0x820] sm:$0xff] }
 0x309   :  { %1284 = vmatmul.mubr.f32.vlgmr.msra.gmra.mrb[4].mxu0 %v677_v26 }
 0x30a   :  { %2819 = vmatpush1.bf16.msra.mxu0 %v2818_v22  ;;  %1354 = vmatprep.mubr.f32.mxu0 %v678_v0  ;;  %v910_v22 = vld [vmem:[%s5195_s4 + $0x730] sm:$0xff]  ;;  %v917_v0 = vld [vmem:[%s5195_s4 + $0x768] sm:$0xff] }
 0x30b   :  { %2821 = vmatprep.subr.bf16.mxu0 %v2820_v23  ;;  %v913_v23 = vld [vmem:[%s5195_s4 + $0x748] sm:$0xff]  ;;  %v2854_v25 = vpack.c.bf16 %v910_v22, %v908_v21 }
 0x30c   :  { %v2856_v26 = vpack.c.bf16 %v915_v24, %v913_v23  ;;  %v945_v21 = vld [vmem:[%s5195_s4 + $0x848] sm:$0xff]  ;;  %v944_v24 = vld [vmem:[%s5195_s4 + $0x840] sm:$0xff] }
 0x30e   :  { %2823 = vmatpush1.bf16.msra.mxu0 %v2822_v31  ;;  %v919_v31 = vld [vmem:[%s5195_s4 + $0x778] sm:$0xff] }
 0x30f   :  { %2825 = vmatprep.subr.bf16.mxu0 %v2824_v27  ;;  %v2858_v27 = vpack.c.bf16 %v914_v29, %v912_v28  ;;  %v2860_v30 = vpack.c.bf16 %v919_v31, %v917_v0  ;;  %v948_v0 = vld [vmem:[%s5195_s4 + $0x860] sm:$0xff]  ;;  %v950_v31 = vld [vmem:[%s5195_s4 + $0x870] sm:$0xff] }
 0x312   :  { %2827 = vmatpush1.bf16.msra.mxu0 %v2826_v9  ;;  %v923_v9 = vld [vmem:[%s5195_s4 + $0x798] sm:$0xff] }
 0x313   :  { %2829 = vmatprep.subr.bf16.mxu0 %v2828_v33  ;;  %v2862_v33 = vpack.c.bf16 %v918_v32, %v916_v51  ;;  %v2864_v34 = vpack.c.bf16 %v923_v9, %v921_v55  ;;  %v2894_v51 = vpack.c.bf16 %v950_v31, %v948_v0  ;;  %v952_v55 = vld [vmem:[%s5195_s4 + $0x880] sm:$0xff]  ;;  %v954_v9 = vld [vmem:[%s5195_s4 + $0x890] sm:$0xff]  ;;  %v989_v31 = vld [vmem:[%s5195_s4 + $0x9a8] sm:$0xff] }
 0x314   :  { %v986_v0 = vld [vmem:[%s5195_s4 + $0x990] sm:$0xff] }
 0x316   :  { %2831 = vmatpush1.bf16.msra.mxu0 %v2830_v1  ;;  %v927_v1 = vld [vmem:[%s5195_s4 + $0x7b8] sm:$0xff] }
 0x317   :  { %2833 = vmatprep.subr.bf16.mxu0 %v2832_v38  ;;  %v2866_v38 = vpack.c.bf16 %v922_v36, %v920_v35  ;;  %v2868_v39 = vpack.c.bf16 %v927_v1, %v925_v37  ;;  %v2898_v35 = vpack.c.bf16 %v954_v9, %v952_v55  ;;  %v956_v37 = vld [vmem:[%s5195_s4 + $0x8a0] sm:$0xff]  ;;  %v958_v1 = vld [vmem:[%s5195_s4 + $0x8b0] sm:$0xff]  ;;  %v993_v9 = vld [vmem:[%s5195_s4 + $0x9c8] sm:$0xff] }
 0x318   :  { %v990_v55 = vld [vmem:[%s5195_s4 + $0x9b0] sm:$0xff] }
 0x31a   :  { %2835 = vmatpush1.bf16.msra.mxu0 %v2834_v44  ;;  %v931_v44 = vld [vmem:[%s5195_s4 + $0x7d8] sm:$0xff] }
 0x31b   :  { %2837 = vmatprep.subr.bf16.mxu0 %v2836_v45  ;;  %v2870_v45 = vpack.c.bf16 %v926_v41, %v924_v40  ;;  %v2872_v46 = vpack.c.bf16 %v931_v44, %v929_v42  ;;  %v2902_v40 = vpack.c.bf16 %v958_v1, %v956_v37  ;;  %v960_v42 = vld [vmem:[%s5195_s4 + $0x8c0] sm:$0xff]  ;;  %v962_v44 = vld [vmem:[%s5195_s4 + $0x8d0] sm:$0xff]  ;;  %v997_v1 = vld [vmem:[%s5195_s4 + $0x9e8] sm:$0xff] }
 0x31c   :  { %v994_v37 = vld [vmem:[%s5195_s4 + $0x9d0] sm:$0xff] }
 0x31d   :  { %v4282_v57 = vpop.f32.mrb[14].mxu1 }
 0x31e   :  { %2839 = vmatpush1.bf16.msra.mxu0 %v2838_v50  ;;  %v4284_v59 = vpop.f32.mrb[15].mxu1  ;;  %v935_v50 = vld [vmem:[%s5195_s4 + $0x7f8] sm:$0xff] }
 0x31f   :  { %2841 = vmatprep.subr.bf16.mxu0 %v2840_v52  ;;  %v2874_v52 = vpack.c.bf16 %v930_v48, %v928_v47  ;;  %v2876_v53 = vpack.c.bf16 %v935_v50, %v933_v49  ;;  %v2906_v47 = vpack.c.bf16 %v962_v44, %v960_v42  ;;  %v964_v49 = vld [vmem:[%s5195_s4 + $0x8e0] sm:$0xff]  ;;  %v966_v50 = vld [vmem:[%s5195_s4 + $0x8f0] sm:$0xff]  ;;  %v1001_v44 = vld [vmem:[%s5195_s4 + $0xa08] sm:$0xff] }
 0x320   :  { %v2910_v8 = vpack.c.bf16 %v966_v50, %v964_v49  ;;  %v998_v42 = vld [vmem:[%s5195_s4 + $0x9f0] sm:$0xff]  ;;  %v1005_v50 = vld [vmem:[%s5195_s4 + $0xa28] sm:$0xff] }
 0x321   :  { %v1002_v49 = vld [vmem:[%s5195_s4 + $0xa10] sm:$0xff] }
 0x322   :  { %2843 = vmatpush1.bf16.msra.mxu0 %v2842_v60  ;;  %v939_v60 = vld [vmem:[%s5195_s4 + $0x818] sm:$0xff] }
 0x323   :  { %2845 = vmatprep.subr.bf16.mxu0 %v2844_v61  ;;  %v3203_v61 = vunpack.i.h.bf16 %v4066_v3  ;;  %v2880_v5 = vpack.c.bf16 %v939_v60, %v937_v56  ;;  %v947_v3 = vld [vmem:[%s5195_s4 + $0x858] sm:$0xff]  ;;  %v968_v56 = vld [vmem:[%s5195_s4 + $0x900] sm:$0xff]  ;;  %v970_v60 = vld [vmem:[%s5195_s4 + $0x910] sm:$0xff] }
 0x324   :  { %v2888_v23 = vpack.c.bf16 %v947_v3, %v945_v21  ;;  %v981_v21 = vld [vmem:[%s5195_s4 + $0x968] sm:$0xff]  ;;  %v983_v3 = vld [vmem:[%s5195_s4 + $0x978] sm:$0xff] }
 0x325   :  { %v653_v15 = vsel %vm651_vm13, %v3202_v7, %v3203_v61  ;;  %v973_v61 = vld [vmem:[%s5195_s4 + $0x928] sm:$0xff] }
 0x326   :  { %2847 = vmatpush1.bf16.msra.mxu0 %v2846_v11  ;;  %v941_v11 = vld [vmem:[%s5195_s4 + $0x828] sm:$0xff] }
 0x327   :  { %2849 = vmatprep.subr.bf16.mxu0 %v2848_v12  ;;  %v943_v12 = vld [vmem:[%s5195_s4 + $0x838] sm:$0xff] }
 0x328   :  { %v2884_v17 = vpack.c.bf16 %v943_v12, %v941_v11  ;;  %v974_v11 = vld [vmem:[%s5195_s4 + $0x930] sm:$0xff]  ;;  %v977_v12 = vld [vmem:[%s5195_s4 + $0x948] sm:$0xff] }
 0x32a   :  { %2851 = vmatpush1.bf16.msra.mxu0 %v2850_v19  ;;  %v942_v19 = vld [vmem:[%s5195_s4 + $0x830] sm:$0xff] }
 0x32b   :  { %2853 = vmatprep.subr.bf16.mxu0 %v2852_v20  ;;  %v4416_v20 = vpop.permute.xlu0 %666  ;;  %v2886_v22 = vpack.c.bf16 %v942_v19, %v940_v18  ;;  %v976_v18 = vld [vmem:[%s5195_s4 + $0x940] sm:$0xff]  ;;  %v978_v19 = vld [vmem:[%s5195_s4 + $0x950] sm:$0xff] }
 0x32c   :  { %v679_v7 = vsel %vm119_vm5, %v653_v15, %v4416_v20  ;;  %v2918_v15 = vpack.c.bf16 %v974_v11, %v972_v10 }
 0x32e   :  { %2855 = vmatpush1.bf16.msra.mxu0 %v2854_v25  ;;  %v946_v25 = vld [vmem:[%s5195_s4 + $0x850] sm:$0xff] }
 0x32f   :  { %2857 = vmatprep.subr.bf16.mxu0 %v2856_v26  ;;  %v951_v26 = vld [vmem:[%s5195_s4 + $0x878] sm:$0xff]  ;;  %v2890_v28 = vpack.c.bf16 %v946_v25, %v944_v24  ;;  %v982_v24 = vld [vmem:[%s5195_s4 + $0x970] sm:$0xff]  ;;  %v985_v25 = vld [vmem:[%s5195_s4 + $0x988] sm:$0xff] }
 0x332   :  { %2859 = vmatpush1.bf16.msra.mxu0 %v2858_v27  ;;  %v953_v27 = vld [vmem:[%s5195_s4 + $0x888] sm:$0xff] }
 0x333   :  { %2861 = vmatprep.subr.bf16.mxu0 %v2860_v30  ;;  %v955_v30 = vld [vmem:[%s5195_s4 + $0x898] sm:$0xff] }
 0x334   :  { %v2896_v32 = vpack.c.bf16 %v955_v30, %v953_v27  ;;  %v991_v27 = vld [vmem:[%s5195_s4 + $0x9b8] sm:$0xff] }
 0x336   :  { %2863 = vmatpush1.bf16.msra.mxu0 %v2862_v33  ;;  %v957_v33 = vld [vmem:[%s5195_s4 + $0x8a8] sm:$0xff] }
 0x337   :  { %2865 = vmatprep.subr.bf16.mxu0 %v2864_v34  ;;  %v959_v34 = vld [vmem:[%s5195_s4 + $0x8b8] sm:$0xff] }
 0x338   :  { %v2900_v36 = vpack.c.bf16 %v959_v34, %v957_v33  ;;  %v995_v33 = vld [vmem:[%s5195_s4 + $0x9d8] sm:$0xff] }
 0x33a   :  { %2867 = vmatpush1.bf16.msra.mxu0 %v2866_v38  ;;  %v961_v38 = vld [vmem:[%s5195_s4 + $0x8c8] sm:$0xff] }
 0x33b   :  { %2869 = vmatprep.subr.bf16.mxu0 %v2868_v39  ;;  %v963_v39 = vld [vmem:[%s5195_s4 + $0x8d8] sm:$0xff] }
 0x33c   :  { %v2904_v41 = vpack.c.bf16 %v963_v39, %v961_v38  ;;  %v999_v38 = vld [vmem:[%s5195_s4 + $0x9f8] sm:$0xff] }
 0x33e   :  { %2871 = vmatpush1.bf16.msra.mxu0 %v2870_v45  ;;  %v965_v45 = vld [vmem:[%s5195_s4 + $0x8e8] sm:$0xff] }
 0x33f   :  { %2873 = vmatprep.subr.bf16.mxu0 %v2872_v46  ;;  %v967_v46 = vld [vmem:[%s5195_s4 + $0x8f8] sm:$0xff] }
 0x340   :  { %v2908_v48 = vpack.c.bf16 %v967_v46, %v965_v45  ;;  %v1003_v45 = vld [vmem:[%s5195_s4 + $0xa18] sm:$0xff] }
 0x342   :  { %2875 = vmatpush1.bf16.msra.mxu0 %v2874_v52  ;;  %v969_v52 = vld [vmem:[%s5195_s4 + $0x908] sm:$0xff] }
 0x343   :  { %2877 = vmatprep.subr.bf16.mxu0 %v2876_v53  ;;  %v971_v53 = vld [vmem:[%s5195_s4 + $0x918] sm:$0xff] }
 0x344   :  { %v2912_v54 = vpack.c.bf16 %v971_v53, %v969_v52  ;;  %v1007_v52 = vld [vmem:[%s5195_s4 + $0xa38] sm:$0xff]  ;;  %v4607_v53 = vpop.permute.xlu1 %668 }
 0x346   :  { %2879 = vmatpush1.bf16.msra.mxu0 %v2878_v62  ;;  %v975_v62 = vld [vmem:[%s5195_s4 + $0x938] sm:$0xff] }
 0x347   :  { %2881 = vmatprep.subr.bf16.mxu0 %v2880_v5  ;;  %v2914_v5 = vpack.c.bf16 %v970_v60, %v968_v56  ;;  %v2916_v6 = vpack.c.bf16 %v975_v62, %v973_v61  ;;  %v2948_v56 = vpack.c.bf16 %v1007_v52, %v1005_v50  ;;  %v1004_v60 = vld [vmem:[%s5195_s4 + $0xa20] sm:$0xff]  ;;  %v1006_v61 = vld [vmem:[%s5195_s4 + $0xa30] sm:$0xff]  ;;  %v1009_v62 = vld [vmem:[%s5195_s4 + $0xa48] sm:$0xff] }
 0x348   :  { %v2950_v10 = vpack.c.bf16 %v1006_v61, %v1004_v60  ;;  %v1038_v50 = vld [vmem:[%s5195_s4 + $0xb30] sm:$0xff]  ;;  %v1041_v52 = vld [vmem:[%s5195_s4 + $0xb48] sm:$0xff]  ;;  %v1040_v60 = vld [vmem:[%s5195_s4 + $0xb40] sm:$0xff] }
 0x349   :  { %1355 = vmatmul.mubr.f32.vlgmr.msra.gmra.mrb[4].mxu0 %v4058_v58  ;;  %v949_v58 = vld [vmem:[%s5195_s4 + $0x868] sm:$0xff]  ;;  %v1042_v61 = vld [vmem:[%s5195_s4 + $0xb50] sm:$0xff] }
 0x34a   :  { %2883 = vmatpush1.bf16.msra.mxu0 %v2882_v13  ;;  %1425 = vmatprep.mubr.f32.mxu0 %v679_v7  ;;  %v2892_v29 = vpack.c.bf16 %v951_v26, %v949_v58  ;;  %v979_v13 = vld [vmem:[%s5195_s4 + $0x958] sm:$0xff]  ;;  %v2922_v7 = vpack.c.bf16 %v978_v19, %v976_v18  ;;  %v1012_v19 = vld [vmem:[%s5195_s4 + $0xa60] sm:$0xff] }
 0x34b   :  { %2885 = vmatprep.subr.bf16.mxu0 %v2884_v17  ;;  %v2920_v17 = vpack.c.bf16 %v979_v13, %v977_v12  ;;  %v987_v58 = vld [vmem:[%s5195_s4 + $0x998] sm:$0xff]  ;;  %v1008_v12 = vld [vmem:[%s5195_s4 + $0xa40] sm:$0xff]  ;;  %v1010_v13 = vld [vmem:[%s5195_s4 + $0xa50] sm:$0xff] }
 0x34e   :  { %2887 = vmatpush1.bf16.msra.mxu0 %v2886_v22  ;;  %v2924_v22 = vpack.c.bf16 %v983_v3, %v981_v21  ;;  %v1014_v21 = vld [vmem:[%s5195_s4 + $0xa70] sm:$0xff]  ;;  %v1017_v3 = vld [vmem:[%s5195_s4 + $0xa88] sm:$0xff] }
 0x34f   :  { %2889 = vmatprep.subr.bf16.mxu0 %v2888_v23  ;;  %v980_v23 = vld [vmem:[%s5195_s4 + $0x960] sm:$0xff] }
 0x350   :  { %v2926_v26 = vpack.c.bf16 %v982_v24, %v980_v23  ;;  %v1016_v24 = vld [vmem:[%s5195_s4 + $0xa80] sm:$0xff] }
 0x352   :  { %2891 = vmatpush1.bf16.msra.mxu0 %v2890_v28  ;;  %v2928_v28 = vpack.c.bf16 %v987_v58, %v985_v25  ;;  %v1018_v25 = vld [vmem:[%s5195_s4 + $0xa90] sm:$0xff]  ;;  %v1021_v58 = vld [vmem:[%s5195_s4 + $0xaa8] sm:$0xff] }
 0x353   :  { %2893 = vmatprep.subr.bf16.mxu0 %v2892_v29  ;;  %v984_v29 = vld [vmem:[%s5195_s4 + $0x980] sm:$0xff] }
 0x354   :  { %v2930_v30 = vpack.c.bf16 %v986_v0, %v984_v29  ;;  %v1020_v0 = vld [vmem:[%s5195_s4 + $0xaa0] sm:$0xff] }
 0x356   :  { %2895 = vmatpush1.bf16.msra.mxu0 %v2894_v51  ;;  %v2932_v51 = vpack.c.bf16 %v991_v27, %v989_v31  ;;  %v1022_v31 = vld [vmem:[%s5195_s4 + $0xab0] sm:$0xff]  ;;  %v1025_v27 = vld [vmem:[%s5195_s4 + $0xac8] sm:$0xff] }
 0x357   :  { %2897 = vmatprep.subr.bf16.mxu0 %v2896_v32  ;;  %v988_v32 = vld [vmem:[%s5195_s4 + $0x9a0] sm:$0xff] }
 0x358   :  { %v2934_v34 = vpack.c.bf16 %v990_v55, %v988_v32  ;;  %v1024_v55 = vld [vmem:[%s5195_s4 + $0xac0] sm:$0xff] }
 0x35a   :  { %2899 = vmatpush1.bf16.msra.mxu0 %v2898_v35  ;;  %v2936_v35 = vpack.c.bf16 %v995_v33, %v993_v9  ;;  %v1026_v9 = vld [vmem:[%s5195_s4 + $0xad0] sm:$0xff]  ;;  %v1029_v33 = vld [vmem:[%s5195_s4 + $0xae8] sm:$0xff] }
 0x35b   :  { %2901 = vmatprep.subr.bf16.mxu0 %v2900_v36  ;;  %v992_v36 = vld [vmem:[%s5195_s4 + $0x9c0] sm:$0xff] }
 0x35c   :  { %v2938_v39 = vpack.c.bf16 %v994_v37, %v992_v36  ;;  %v1028_v37 = vld [vmem:[%s5195_s4 + $0xae0] sm:$0xff] }
 0x35e   :  { %2903 = vmatpush1.bf16.msra.mxu0 %v2902_v40  ;;  %v2940_v40 = vpack.c.bf16 %v999_v38, %v997_v1  ;;  %v1030_v1 = vld [vmem:[%s5195_s4 + $0xaf0] sm:$0xff]  ;;  %v1033_v38 = vld [vmem:[%s5195_s4 + $0xb08] sm:$0xff] }
 0x35f   :  { %2905 = vmatprep.subr.bf16.mxu0 %v2904_v41  ;;  %v996_v41 = vld [vmem:[%s5195_s4 + $0x9e0] sm:$0xff] }
 0x360   :  { %v2942_v46 = vpack.c.bf16 %v998_v42, %v996_v41  ;;  %v1032_v42 = vld [vmem:[%s5195_s4 + $0xb00] sm:$0xff] }
 0x362   :  { %2907 = vmatpush1.bf16.msra.mxu0 %v2906_v47  ;;  %v2944_v47 = vpack.c.bf16 %v1003_v45, %v1001_v44  ;;  %v1034_v44 = vld [vmem:[%s5195_s4 + $0xb10] sm:$0xff]  ;;  %v1037_v45 = vld [vmem:[%s5195_s4 + $0xb28] sm:$0xff] }
 0x363   :  { %2909 = vmatprep.subr.bf16.mxu0 %v2908_v48  ;;  %v1000_v48 = vld [vmem:[%s5195_s4 + $0xa00] sm:$0xff] }
 0x366   :  { %2911 = vmatpush1.bf16.msra.mxu0 %v2910_v8  ;;  %v671_v8 = vpop.permute.xlu0 %670 }
 0x367   :  { %2913 = vmatprep.subr.bf16.mxu0 %v2912_v54  ;;  %v2946_v54 = vpack.c.bf16 %v1002_v49, %v1000_v48  ;;  %v1036_v49 = vld [vmem:[%s5195_s4 + $0xb20] sm:$0xff] }
 0x36a   :  { %2915 = vmatpush1.bf16.msra.mxu0 %v2914_v5  ;;  %v1011_v5 = vld [vmem:[%s5195_s4 + $0xa58] sm:$0xff] }
 0x36b   :  { %2917 = vmatprep.subr.bf16.mxu0 %v2916_v6  ;;  %v673_v6 = vsel %vm119_vm5, %v4607_v53, %v671_v8  ;;  %v2952_v11 = vpack.c.bf16 %v1011_v5, %v1009_v62  ;;  %v1043_v8 = vld [vmem:[%s5195_s4 + $0xb58] sm:$0xff]  ;;  %v1045_v62 = vld [vmem:[%s5195_s4 + $0xb68] sm:$0xff] }
 0x36c   :  { %v1047_v5 = vld [vmem:[%s5195_s4 + $0xb78] sm:$0xff] }
 0x36e   :  { %2919 = vmatpush1.bf16.msra.mxu0 %v2918_v15  ;;  %v1013_v15 = vld [vmem:[%s5195_s4 + $0xa68] sm:$0xff] }
 0x36f   :  { %2921 = vmatprep.subr.bf16.mxu0 %v2920_v17  ;;  %v2954_v17 = vpack.c.bf16 %v1010_v13, %v1008_v12  ;;  %v1046_v12 = vld [vmem:[%s5195_s4 + $0xb70] sm:$0xff]  ;;  %v1049_v13 = vld [vmem:[%s5195_s4 + $0xb88] sm:$0xff] }
 0x372   :  { %2923 = vmatpush1.bf16.msra.mxu0 %v2922_v7  ;;  %v1019_v7 = vld [vmem:[%s5195_s4 + $0xa98] sm:$0xff] }
 0x373   :  { %2925 = vmatprep.subr.bf16.mxu0 %v2924_v22  ;;  %v2958_v22 = vpack.c.bf16 %v1014_v21, %v1012_v19  ;;  %v2960_v23 = vpack.c.bf16 %v1019_v7, %v1017_v3  ;;  %v1050_v19 = vld [vmem:[%s5195_s4 + $0xb90] sm:$0xff]  ;;  %v1053_v21 = vld [vmem:[%s5195_s4 + $0xba8] sm:$0xff]  ;;  %v1055_v3 = vld [vmem:[%s5195_s4 + $0xbb8] sm:$0xf] }
 0x376   :  { %2927 = vmatpush1.bf16.msra.mxu0 %v2926_v26  ;;  %v1023_v26 = vld [vmem:[%s5195_s4 + $0xab8] sm:$0xff] }
 0x377   :  { %2929 = vmatprep.subr.bf16.mxu0 %v2928_v28  ;;  %v2962_v28 = vpack.c.bf16 %v1018_v25, %v1016_v24  ;;  %v2964_v29 = vpack.c.bf16 %v1023_v26, %v1021_v58  ;;  %v1054_v24 = vld [vmem:[%s5195_s4 + $0xbb0] sm:$0xf]  ;;  %v672_v26 = vsel %vm119_vm5, %v4416_v20, %v4607_v53  ;;  %vm2259_vm5 = vcmask 1040384  }
 0x37a   :  { %2931 = vmatpush1.bf16.msra.mxu0 %v2930_v30  ;;  %v1027_v30 = vld [vmem:[%s5195_s4 + $0xad8] sm:$0xff] }
 0x37b   :  { %2933 = vmatprep.subr.bf16.mxu0 %v2932_v51  ;;  %v2966_v51 = vpack.c.bf16 %v1022_v31, %v1020_v0  ;;  %v2968_v32 = vpack.c.bf16 %v1027_v30, %v1025_v27 }
 0x37e   :  { %2935 = vmatpush1.bf16.msra.mxu0 %v2934_v34  ;;  %v1031_v34 = vld [vmem:[%s5195_s4 + $0xaf8] sm:$0xff] }
 0x37f   :  { %2937 = vmatprep.subr.bf16.mxu0 %v2936_v35  ;;  %v2970_v35 = vpack.c.bf16 %v1026_v9, %v1024_v55  ;;  %v2972_v36 = vpack.c.bf16 %v1031_v34, %v1029_v33 }
 0x382   :  { %2939 = vmatpush1.bf16.msra.mxu0 %v2938_v39  ;;  %v1035_v39 = vld [vmem:[%s5195_s4 + $0xb18] sm:$0xff] }
 0x383   :  { %2941 = vmatprep.subr.bf16.mxu0 %v2940_v40  ;;  %v2974_v40 = vpack.c.bf16 %v1030_v1, %v1028_v37  ;;  %v2976_v41 = vpack.c.bf16 %v1035_v39, %v1033_v38  ;;  %v1620_v37 = vld [vmem:[%s5198_s7 + $0x8] sm:$0xff]  ;;  %v1637_v1 = vld [vmem:[%s5198_s7 + $0x90] sm:$0xff]  ;;  %v1638_v38 = vld [vmem:[%s5198_s7 + $0x98] sm:$0xff] }
 0x386   :  { %2943 = vmatpush1.bf16.msra.mxu0 %v2942_v46  ;;  %v1039_v46 = vld [vmem:[%s5195_s4 + $0xb38] sm:$0xff] }
 0x387   :  { %2945 = vmatprep.subr.bf16.mxu0 %v2944_v47  ;;  %v2978_v47 = vpack.c.bf16 %v1034_v44, %v1032_v42  ;;  %v2980_v48 = vpack.c.bf16 %v1039_v46, %v1037_v45  ;;  %v1622_v42 = vld [vmem:[%s5198_s7 + $0x18] sm:$0xff]  ;;  %v1639_v44 = vld [vmem:[%s5198_s7 + $0xa0] sm:$0xff]  ;;  %v1640_v45 = vld [vmem:[%s5198_s7 + $0xa8] sm:$0xff] }
 0x389   :  { %1426 = vmatmul.mubr.f32.vlgmr.msra.gmra.mrb[4].mxu0 %v4087_v14  ;;  %v1015_v14 = vld [vmem:[%s5195_s4 + $0xa78] sm:$0xff] }
 0x38a   :  { %2947 = vmatpush1.bf16.msra.mxu0 %v2946_v54  ;;  %2292 = vmatprep.mubr.msk.f32.mxu0 %vm1068_vm14, %v673_v6  ;;  %v2956_v18 = vpack.c.bf16 %v1015_v14, %v1013_v15  ;;  %v2982_v54 = vpack.c.bf16 %v1038_v50, %v1036_v49  ;;  %v2986_v6 = vpack.c.bf16 %v1042_v61, %v1040_v60  ;;  %v1051_v15 = vld [vmem:[%s5195_s4 + $0xb98] sm:$0xff]  ;;  %v1624_v49 = vld [vmem:[%s5198_s7 + $0x28] sm:$0xff]  ;;  %v1641_v50 = vld [vmem:[%s5198_s7 + $0xb0] sm:$0xff] }
 0x38b   :  { %2949 = vmatprep.subr.bf16.mxu0 %v2948_v56  ;;  %v2984_v56 = vpack.c.bf16 %v1043_v8, %v1041_v52  ;;  %v1642_v52 = vld [vmem:[%s5198_s7 + $0xb8] sm:$0xff]  ;;  %v1643_v61 = vld [vmem:[%s5198_s7 + $0xc0] sm:$0xff] }
 0x38c   :  { %v1626_v60 = vld [vmem:[%s5198_s7 + $0x38] sm:$0xff] }
 0x38e   :  { %2951 = vmatpush1.bf16.msra.mxu0 %v2950_v10  ;;  %v2988_v10 = vpack.c.bf16 %v1047_v5, %v1045_v62  ;;  %v1644_v62 = vld [vmem:[%s5198_s7 + $0xc8] sm:$0xff] }
 0x38f   :  { %2953 = vmatprep.subr.bf16.mxu0 %v2952_v11  ;;  %v1044_v11 = vld [vmem:[%s5195_s4 + $0xb60] sm:$0xff] }
 0x390   :  { %v2990_v14 = vpack.c.bf16 %v1046_v12, %v1044_v11  ;;  %v1628_v11 = vld [vmem:[%s5198_s7 + $0x48] sm:$0xff]  ;;  %v1645_v12 = vld [vmem:[%s5198_s7 + $0xd0] sm:$0xff] }
 0x392   :  { %2955 = vmatpush1.bf16.msra.mxu0 %v2954_v17  ;;  %v2992_v17 = vpack.c.bf16 %v1051_v15, %v1049_v13  ;;  %v1646_v13 = vld [vmem:[%s5198_s7 + $0xd8] sm:$0xff] }
 0x393   :  { %2957 = vmatprep.subr.bf16.mxu0 %v2956_v18  ;;  %v1048_v18 = vld [vmem:[%s5195_s4 + $0xb80] sm:$0xff] }
 0x394   :  { %v2994_v7 = vpack.c.bf16 %v1050_v19, %v1048_v18  ;;  %v1630_v18 = vld [vmem:[%s5198_s7 + $0x58] sm:$0xff]  ;;  %v1647_v19 = vld [vmem:[%s5198_s7 + $0xe0] sm:$0xff] }
 0x396   :  { %2959 = vmatpush1.bf16.msra.mxu0 %v2958_v22  ;;  %v2996_v22 = vpack.c.bf16 %v1055_v3, %v1053_v21  ;;  %v1648_v21 = vld [vmem:[%s5198_s7 + $0xe8] sm:$0xff] }
 0x397   :  { %2961 = vmatprep.subr.bf16.mxu0 %v2960_v23  ;;  %v1052_v23 = vld [vmem:[%s5195_s4 + $0xba0] sm:$0xff] }
 0x398   :  { %v2999_v58 = vpack.c.bf16 %v1054_v24, %v1052_v23  ;;  %v1632_v23 = vld [vmem:[%s5198_s7 + $0x68] sm:$0xff]  ;;  %v1649_v24 = vld [vmem:[%s5198_s7 + $0xf0] sm:$0xff] }
 0x39a   :  { %2963 = vmatpush1.bf16.msra.mxu0 %v2962_v28  ;;  %v1056_v28 = vld [vmem:[%s5196_s5] sm:$0x3] }
 0x39b   :  { %2965 = vmatprep.subr.bf16.mxu0 %v2964_v29  ;;  %v1061_v29 = vrot.slane %v1056_v28, %v3537_v2  ;;  %v1065_v0 = vrot.slane %v1056_v28, %v184_v4  ;;  %v1636_v4 = vld [vmem:[%s5198_s7 + $0x88] sm:$0xff] }
 0x39d   :  { %v1144_v31 = vadd.f32 %v4282_v57, %v1061_v29  ;;  %v1146_v27 = vadd.f32 %v4284_v59, %v1065_v0  ;;  %v1619_v57 = vld [vmem:[%s5198_s7] sm:$0xff]  ;;  %v3002_v59 = vpack.c.bf16 %v1636_v4, %v1635_v63  ;;  %v1633_v29 = vld [vmem:[%s5198_s7 + $0x70] sm:$0xff]  ;;  %v1634_v0 = vld [vmem:[%s5198_s7 + $0x78] sm:$0xff] }
 0x39e   :  { %2967 = vmatpush1.bf16.msra.mxu0 %v2966_v51  ;;  %v3004_v39 = vpack.c.bf16 %v1620_v37, %v1619_v57  ;;  %v1670_v63 = vld [vmem:[%s5198_s7 + $0x198] sm:$0xff] }
 0x39f   :  { %2969 = vmatprep.subr.bf16.mxu0 %v2968_v32 }
 0x3a2   :  { %2971 = vmatpush1.bf16.msra.mxu0 %v2970_v35 }
 0x3a3   :  { %2973 = vmatprep.subr.bf16.mxu0 %v2972_v36  ;;  %v1513_v36 = vld [vmem:[%s5197_s6] sm:$0xf] }
 0x3a6   :  { %2975 = vmatpush1.bf16.msra.mxu0 %v2974_v40  ;;  %v3006_v40 = vpack.c.bf16 %v1638_v38, %v1637_v1  ;;  %v1653_v1 = vld [vmem:[%s5198_s7 + $0x110] sm:$0xff]  ;;  %v1654_v38 = vld [vmem:[%s5198_s7 + $0x118] sm:$0xff] }
 0x3a7   :  { %2977 = vmatprep.subr.bf16.mxu0 %v2976_v41  ;;  %v1621_v41 = vld [vmem:[%s5198_s7 + $0x10] sm:$0xff] }
 0x3a8   :  { %v3008_v46 = vpack.c.bf16 %v1622_v42, %v1621_v41 }
 0x3aa   :  { %2979 = vmatpush1.bf16.msra.mxu0 %v2978_v47  ;;  %v3010_v47 = vpack.c.bf16 %v1640_v45, %v1639_v44  ;;  %v3040_v44 = vpack.c.bf16 %v1654_v38, %v1653_v1  ;;  %v1694_v1 = vld [vmem:[%s5198_s7 + $0x258] sm:$0xff] }
 0x3ab   :  { %2981 = vmatprep.subr.bf16.mxu0 %v2980_v48  ;;  %v1623_v48 = vld [vmem:[%s5198_s7 + $0x20] sm:$0xff] }
 0x3ac   :  { %v3012_v8 = vpack.c.bf16 %v1624_v49, %v1623_v48  ;;  %v1656_v48 = vld [vmem:[%s5198_s7 + $0x128] sm:$0xff]  ;;  %v1673_v49 = vld [vmem:[%s5198_s7 + $0x1b0] sm:$0xff] }
 0x3ae   :  { %2983 = vmatpush1.bf16.msra.mxu0 %v2982_v54  ;;  %v3014_v54 = vpack.c.bf16 %v1642_v52, %v1641_v50  ;;  %v1674_v50 = vld [vmem:[%s5198_s7 + $0x1b8] sm:$0xff] }
 0x3af   :  { %2985 = vmatprep.subr.bf16.mxu0 %v2984_v56  ;;  %v1625_v56 = vld [vmem:[%s5198_s7 + $0x30] sm:$0xff] }
 0x3b0   :  { %v3016_v5 = vpack.c.bf16 %v1626_v60, %v1625_v56  ;;  %v1658_v56 = vld [vmem:[%s5198_s7 + $0x138] sm:$0xff]  ;;  %v1675_v60 = vld [vmem:[%s5198_s7 + $0x1c0] sm:$0xff] }
 0x3b2   :  { %2987 = vmatpush1.bf16.msra.mxu0 %v2986_v6  ;;  %v3018_v6 = vpack.c.bf16 %v1644_v62, %v1643_v61  ;;  %v1676_v61 = vld [vmem:[%s5198_s7 + $0x1c8] sm:$0xff] }
 0x3b3   :  { %2989 = vmatprep.subr.bf16.mxu0 %v2988_v10  ;;  %v1627_v10 = vld [vmem:[%s5198_s7 + $0x40] sm:$0xff] }
 0x3b4   :  { %v3020_v15 = vpack.c.bf16 %v1628_v11, %v1627_v10  ;;  %v1660_v10 = vld [vmem:[%s5198_s7 + $0x148] sm:$0xff]  ;;  %v1677_v11 = vld [vmem:[%s5198_s7 + $0x1d0] sm:$0xff] }
 0x3b6   :  { %2991 = vmatpush1.bf16.msra.mxu0 %v2990_v14  ;;  %v3022_v14 = vpack.c.bf16 %v1646_v13, %v1645_v12  ;;  %v1678_v12 = vld [vmem:[%s5198_s7 + $0x1d8] sm:$0xff] }
 0x3b7   :  { %2993 = vmatprep.subr.bf16.mxu0 %v2992_v17  ;;  %v1629_v17 = vld [vmem:[%s5198_s7 + $0x50] sm:$0xff] }
 0x3b8   :  { %v3024_v3 = vpack.c.bf16 %v1630_v18, %v1629_v17  ;;  %v1662_v17 = vld [vmem:[%s5198_s7 + $0x158] sm:$0xff]  ;;  %v1679_v18 = vld [vmem:[%s5198_s7 + $0x1e0] sm:$0xff] }
 0x3ba   :  { %2995 = vmatpush1.bf16.msra.mxu0 %v2994_v7  ;;  %v3026_v7 = vpack.c.bf16 %v1648_v21, %v1647_v19  ;;  %v1680_v19 = vld [vmem:[%s5198_s7 + $0x1e8] sm:$0xff] }
 0x3bb   :  { %2998 = vmatprep.subr.msk.bf16.mxu0 %vm4763_vm1, %v2996_v22  ;;  %v1631_v22 = vld [vmem:[%s5198_s7 + $0x60] sm:$0xff] }
 0x3be   :  { %3001 = vmatpush1.bf16.msk.msra.mxu0 %vm4763_vm1, %v2999_v58  ;;  %v1650_v58 = vld [vmem:[%s5198_s7 + $0xf8] sm:$0xff] }
 0x3bf   :  { %v3030_v28 = vpack.c.bf16 %v1650_v58, %v1649_v24  ;;  %v1682_v24 = vld [vmem:[%s5198_s7 + $0x1f8] sm:$0xff] }
 0x3c1   :  { %1497 = vmatmul.mubr.f32.vlgmr.msra.gmra.mrb[4].mxu0 %v672_v26  ;;  %v3028_v26 = vpack.c.bf16 %v1632_v23, %v1631_v22  ;;  %v1664_v22 = vld [vmem:[%s5198_s7 + $0x168] sm:$0xff]  ;;  %v1681_v23 = vld [vmem:[%s5198_s7 + $0x1f0] sm:$0xff] }
 0x494   :  { %v1498_v30 = vpop.f32.mrb[4].mxu0 }
 0x495   :  { %v3158_v51 = vadd.f32 %v1498_v30, %v1144_v31  ;;  %v1500_v32 = vpop.f32.mrb[5].mxu0  ;;  %v3032_v31 = vpack.c.bf16 %v1634_v0, %v1633_v29  ;;  %v1668_v30 = vld [vmem:[%s5198_s7 + $0x188] sm:$0xff]  ;;  %v1666_v29 = vld [vmem:[%s5198_s7 + $0x178] sm:$0xff] }
 0x496   :  { %v3160_v55 = vadd.f32 %v1500_v32, %v1146_v27  ;;  %v1667_v27 = vld [vmem:[%s5198_s7 + $0x180] sm:$0xff] }
 0x497   :  { %v1503_v9 = vmax.f32 %v3158_v51, 0.0  ;;  %v3034_v51 = vpack.c.bf16 %v1668_v30, %v1667_v27  ;;  %v1684_v27 = vld [vmem:[%s5198_s7 + $0x208] sm:$0xff] }
 0x498   :  { %v1504_v20 = vmax.f32 %v3160_v55, 0.0 }
 0x499   :  { %v1507_v53 = vrot.slane %v1503_v9, 1 }
 0x49a   :  { %v1508_v33 = vrot.slane %v1504_v20, 1 }
 0x49b   :  { %v1511_v35 = vmax.f32 %v1503_v9, %v1507_v53 }
 0x49c   :  { %v1512_v34 = vmax.f32 %v1504_v20, %v1508_v33 }
 0x49e   :  { %2293 = vmatprep.subr.msk.mxu1 %vm47_vm0, %v1512_v34  ;;  %v1651_v34 = vld [vmem:[%s5198_s7 + $0x100] sm:$0xff] }
 0x49f   :  { %2294 = vmatpush1.msk.msra.mxu1 %vm47_vm0, %v1511_v35  ;;  %v1652_v35 = vld [vmem:[%s5198_s7 + $0x108] sm:$0xff]  ;;  %vm1603_vm0 = vcmask 916480  }
 0x4a0   :  { %2295 = vmatmul.mubr.msk.f32.vlgmr.msra.gmra.mrb[16].mxu1 %vm1514_vm2, %v1513_v36  ;;  %3003 = vmatprep.subr.bf16.mxu1 %v3002_v59  ;;  %v1669_v36 = vld [vmem:[%s5198_s7 + $0x190] sm:$0xff]  ;;  %v3036_v57 = vpack.c.bf16 %v1652_v35, %v1651_v34 }
 0x4a1   :  { %3005 = vmatpush3.bf16.msra.mxu1 %v3004_v39  ;;  %v3038_v37 = vpack.c.bf16 %v1670_v63, %v1669_v36  ;;  %v1671_v39 = vld [vmem:[%s5198_s7 + $0x1a0] sm:$0xff]  ;;  %v1689_v35 = vld [vmem:[%s5198_s7 + $0x230] sm:$0xff]  ;;  %v1690_v36 = vld [vmem:[%s5198_s7 + $0x238] sm:$0xff] }
 0x4a2   :  { %3007 = vmatprep.subr.bf16.mxu1 %v3006_v40  ;;  %v1672_v40 = vld [vmem:[%s5198_s7 + $0x1a8] sm:$0xff]  ;;  %v3076_v63 = vpack.c.bf16 %v1690_v36, %v1689_v35  ;;  %v2303_v35 = vld [vmem:[%s5200_s9 + $0x58] sm:$0xff] }
 0x4a5   :  { %3009 = vmatpush3.bf16.msra.mxu1 %v3008_v46  ;;  %v3042_v46 = vpack.c.bf16 %v1672_v40, %v1671_v39  ;;  %v1695_v39 = vld [vmem:[%s5198_s7 + $0x260] sm:$0xff]  ;;  %v1696_v40 = vld [vmem:[%s5198_s7 + $0x268] sm:$0xff] }
 0x4a6   :  { %3011 = vmatprep.subr.bf16.mxu1 %v3010_v47  ;;  %v1655_v47 = vld [vmem:[%s5198_s7 + $0x120] sm:$0xff] }
 0x4a7   :  { %v3044_v52 = vpack.c.bf16 %v1656_v48, %v1655_v47  ;;  %v1699_v47 = vld [vmem:[%s5198_s7 + $0x280] sm:$0xff]  ;;  %v1700_v48 = vld [vmem:[%s5198_s7 + $0x288] sm:$0xff] }
 0x4a9   :  { %3013 = vmatpush3.bf16.msra.mxu1 %v3012_v8  ;;  %v3046_v8 = vpack.c.bf16 %v1674_v50, %v1673_v49  ;;  %v3091_v49 = vpack.c.bf16 %v1700_v48, %v1699_v47  ;;  %v1701_v50 = vld [vmem:[%s5198_s7 + $0x290] sm:$0xff] }
 0x4aa   :  { %3015 = vmatprep.subr.bf16.mxu1 %v3014_v54  ;;  %v1657_v54 = vld [vmem:[%s5198_s7 + $0x130] sm:$0xff] }
 0x4ab   :  { %v3048_v62 = vpack.c.bf16 %v1658_v56, %v1657_v54  ;;  %v1703_v54 = vld [vmem:[%s5198_s7 + $0x2a0] sm:$0xff]  ;;  %v1704_v56 = vld [vmem:[%s5198_s7 + $0x2a8] sm:$0xff] }
 0x4ad   :  { %3017 = vmatpush3.bf16.msra.mxu1 %v3016_v5  ;;  %v3050_v5 = vpack.c.bf16 %v1676_v61, %v1675_v60  ;;  %v3097_v60 = vpack.c.bf16 %v1704_v56, %v1703_v54  ;;  %v1705_v61 = vld [vmem:[%s5198_s7 + $0x2b0] sm:$0xff] }
 0x4ae   :  { %3019 = vmatprep.subr.bf16.mxu1 %v3018_v6  ;;  %v1659_v6 = vld [vmem:[%s5198_s7 + $0x140] sm:$0xff] }
 0x4af   :  { %v3052_v13 = vpack.c.bf16 %v1660_v10, %v1659_v6  ;;  %v1707_v6 = vld [vmem:[%s5198_s7 + $0x2c0] sm:$0xff]  ;;  %v1708_v10 = vld [vmem:[%s5198_s7 + $0x2c8] sm:$0xff] }
 0x4b1   :  { %3021 = vmatpush3.bf16.msra.mxu1 %v3020_v15  ;;  %v3054_v15 = vpack.c.bf16 %v1678_v12, %v1677_v11  ;;  %v3103_v11 = vpack.c.bf16 %v1708_v10, %v1707_v6 }
 0x4b2   :  { %3023 = vmatprep.subr.bf16.mxu1 %v3022_v14  ;;  %v1661_v14 = vld [vmem:[%s5198_s7 + $0x150] sm:$0xff] }
 0x4b3   :  { %v3056_v21 = vpack.c.bf16 %v1662_v17, %v1661_v14  ;;  %v1933_v14 = vld [vmem:[%s5200_s9 + $0x10] sm:$0xff] }
 0x4b5   :  { %3025 = vmatpush3.bf16.msra.mxu1 %v3024_v3  ;;  %v3058_v3 = vpack.c.bf16 %v1680_v19, %v1679_v18  ;;  %v1935_v19 = vld [vmem:[%s5200_s9 + $0x20] sm:$0xff] }
 0x4b6   :  { %3027 = vmatprep.subr.bf16.mxu1 %v3026_v7  ;;  %v1663_v7 = vld [vmem:[%s5198_s7 + $0x160] sm:$0xff] }
 0x4b7   :  { %v3060_v58 = vpack.c.bf16 %v1664_v22, %v1663_v7  ;;  %v1937_v7 = vld [vmem:[%s5200_s9 + $0x30] sm:$0xff]  ;;  %v1938_v22 = vld [vmem:[%s5200_s9 + $0x38] sm:$0xf] }
 0x4b9   :  { %3029 = vmatpush3.bf16.msra.mxu1 %v3028_v26  ;;  %v3062_v26 = vpack.c.bf16 %v1682_v24, %v1681_v23  ;;  %v3115_v23 = vpack.c.bf16 %v1938_v22, %v1937_v7 }
 0x4ba   :  { %3031 = vmatprep.subr.bf16.mxu1 %v3030_v28  ;;  %v1665_v28 = vld [vmem:[%s5198_s7 + $0x170] sm:$0xff] }
 0x4bb   :  { %v3064_v0 = vpack.c.bf16 %v1666_v29, %v1665_v28  ;;  %v2296_v28 = vld [vmem:[%s5199_s8] ss:$0 sm:$0xff] }
 0x4bd   :  { %3033 = vmatpush3.bf16.msra.mxu1 %v3032_v31  ;;  %v1683_v31 = vld [vmem:[%s5198_s7 + $0x200] sm:$0xff] }
 0x4be   :  { %3035 = vmatprep.subr.bf16.mxu1 %v3034_v51  ;;  %v3067_v30 = vpack.c.bf16 %v1684_v27, %v1683_v31  ;;  %v1685_v51 = vld [vmem:[%s5198_s7 + $0x210] sm:$0xff] }
 0x573   :  { %v1590_v32 = vpop.f32.mrb[16].mxu1 }
 0x574   :  { %v1597_v55 = vrot.slane %v1590_v32, 1  ;;  %v1592_v9 = vpop.f32.mrb[17].mxu1  ;;  %v1608_v53 = vrot.slane %v1590_v32, 2 }
 0x575   :  { %v1598_v20 = vrot.slane %v1592_v9, 1  ;;  %v1609_v33 = vrot.slane %v1592_v9, 2 }
 0x576   :  { %1599 = vrot.lane.b32.xlu1 %v1597_v55, %s3239_s14 }
 0x577   :  { %1601 = vrot.lane.b32.xlu0 %v1598_v20, %s3239_s14 }
 0x57a   :  { %1610 = vrot.lane.b32.xlu1 %v1608_v53, %s3231_s19  ;;  %v1687_v53 = vld [vmem:[%s5198_s7 + $0x220] sm:$0xff] }
 0x57b   :  { %1612 = vrot.lane.b32.xlu0 %v1609_v33, %s3231_s19  ;;  %v1688_v33 = vld [vmem:[%s5198_s7 + $0x228] sm:$0xff] }
 0x57c   :  { %v3073_v34 = vpack.c.bf16 %v1688_v33, %v1687_v53 }
 0x5e8   :  { %v4903_v4 = vpop.permute.xlu1 %1599 }
 0x5e9   :  { %v1617_v59 = vsel %vm1603_vm0, %v1592_v9, %v4903_v4  ;;  %v1602_v41 = vpop.permute.xlu0 %1601 }
 0x5ea   :  { %1783 = vmatprep.mubr.f32.mxu1 %v1617_v59  ;;  %v1604_v55 = vsel %vm1603_vm0, %v4903_v4, %v1602_v41  ;;  %v1691_v4 = vld [vmem:[%s5198_s7 + $0x240] sm:$0xff] }
 0x5eb   :  { %1784 = vmatmul.mubr.f32.vlgmr.msra.gmra.mrb[18].mxu1 %v1590_v32  ;;  %v1686_v32 = vld [vmem:[%s5198_s7 + $0x218] sm:$0xff] }
 0x5ec   :  { %3037 = vmatpush3.bf16.msra.mxu1 %v3036_v57  ;;  %v4919_v42 = vpop.permute.xlu1 %1610  ;;  %v3070_v20 = vpack.c.bf16 %v1686_v32, %v1685_v51  ;;  %v1692_v57 = vld [vmem:[%s5198_s7 + $0x248] sm:$0xff]  ;;  %v2300_v51 = vld [vmem:[%s5200_s9 + $0x40] sm:$0xff] }
 0x5ed   :  { %3039 = vmatprep.subr.bf16.mxu1 %v3038_v37  ;;  %v1618_v45 = vsel %vm127_vm7, %v1602_v41, %v4919_v42  ;;  %v5004_v9 = vpop.permute.xlu0 %1612  ;;  %v3079_v59 = vpack.c.bf16 %v1692_v57, %v1691_v4  ;;  %v1693_v37 = vld [vmem:[%s5198_s7 + $0x250] sm:$0xff]  ;;  %v3085_v41 = vpack.c.bf16 %v1696_v40, %v1695_v39  ;;  %v2301_v32 = vld [vmem:[%s5200_s9 + $0x48] sm:$0xff]  ;;  %v2304_v4 = vld [vmem:[%s5200_s9 + $0x60] sm:$0xff] }
 0x5ee   :  { %1853 = vmatprep.mubr.f32.mxu1 %v1618_v45  ;;  %v3082_v38 = vpack.c.bf16 %v1694_v1, %v1693_v37  ;;  %v1698_v45 = vld [vmem:[%s5198_s7 + $0x278] sm:$0xff]  ;;  %v1614_v12 = vsel %vm127_vm7, %v4919_v42, %v5004_v9  ;;  %v3119_v53 = vpack.c.bf16 %v2301_v32, %v2300_v51  ;;  %v2305_v57 = vld [vmem:[%s5200_s9 + $0x68] sm:$0xff]  ;;  %v2306_v37 = vld [vmem:[%s5200_s9 + $0x70] sm:$0xff] }
 0x5ef   :  { %v1934_v42 = vld [vmem:[%s5200_s9 + $0x18] sm:$0xff] }
 0x5f0   :  { %3041 = vmatpush3.bf16.msra.mxu1 %v3040_v44  ;;  %v1697_v44 = vld [vmem:[%s5198_s7 + $0x270] sm:$0xff]  ;;  %v3109_v18 = vpack.c.bf16 %v1934_v42, %v1933_v14  ;;  %v2307_v1 = vld [vmem:[%s5200_s9 + $0x78] sm:$0xf] }
 0x5f1   :  { %3043 = vmatprep.subr.bf16.mxu1 %v3042_v46  ;;  %v3088_v46 = vpack.c.bf16 %v1698_v45, %v1697_v44 }
 0x5f4   :  { %3045 = vmatpush3.bf16.msra.mxu1 %v3044_v52  ;;  %v1702_v52 = vld [vmem:[%s5198_s7 + $0x298] sm:$0xff] }
 0x5f5   :  { %3047 = vmatprep.subr.bf16.mxu1 %v3046_v8  ;;  %v3094_v8 = vpack.c.bf16 %v1702_v52, %v1701_v50 }
 0x5f8   :  { %3049 = vmatpush3.bf16.msra.mxu1 %v3048_v62  ;;  %v1706_v62 = vld [vmem:[%s5198_s7 + $0x2b8] sm:$0xff] }
 0x5f9   :  { %3051 = vmatprep.subr.bf16.mxu1 %v3050_v5  ;;  %v3100_v5 = vpack.c.bf16 %v1706_v62, %v1705_v61 }
 0x5fc   :  { %3053 = vmatpush3.bf16.msra.mxu1 %v3052_v13  ;;  %v1931_v13 = vld [vmem:[%s5200_s9] sm:$0xff] }
 0x5fd   :  { %3055 = vmatprep.subr.bf16.mxu1 %v3054_v15  ;;  %v1932_v15 = vld [vmem:[%s5200_s9 + $0x8] sm:$0xff] }
 0x5fe   :  { %v3106_v17 = vpack.c.bf16 %v1932_v15, %v1931_v13 }
 0x600   :  { %3057 = vmatpush3.bf16.msra.mxu1 %v3056_v21  ;;  %v1936_v21 = vld [vmem:[%s5200_s9 + $0x28] sm:$0xff] }
 0x601   :  { %3059 = vmatprep.subr.bf16.mxu1 %v3058_v3  ;;  %v3112_v3 = vpack.c.bf16 %v1936_v21, %v1935_v19 }
 0x604   :  { %3061 = vmatpush3.bf16.msra.mxu1 %v3060_v58 }
 0x605   :  { %3063 = vmatprep.subr.bf16.mxu1 %v3062_v26 }
 0x608   :  { %3065 = vmatpush3.bf16.msra.mxu1 %v3064_v0 }
 0x609   :  { %3066 = vmatprep.subr.bf16.mxu1 %v3233_v16 }
 0x60b   :  { %1854 = vmatmul.mubr.f32.vlgmr.msra.gmra.mrb[20].mxu1 %v1604_v55 }
 0x60c   :  { %3068 = vmatpush1.bf16.msra.mxu1 %v3067_v30  ;;  %2297 = vmatprep.mubr.msk.f32.mxu1 %vm1716_vm3, %v5004_v9 }
 0x60d   :  { %3069 = vmatprep.subr.bf16.mxu1 %v3233_v16 }
 0x610   :  { %3071 = vmatpush1.bf16.msra.mxu1 %v3070_v20 }
 0x611   :  { %3072 = vmatprep.subr.bf16.mxu1 %v3233_v16 }
 0x614   :  { %3074 = vmatpush1.bf16.msra.mxu1 %v3073_v34  ;;  %v2302_v34 = vld [vmem:[%s5200_s9 + $0x50] sm:$0xff] }
 0x615   :  { %3075 = vmatprep.subr.bf16.mxu1 %v3233_v16 }
 0x618   :  { %3077 = vmatpush1.bf16.msra.mxu1 %v3076_v63  ;;  %v3122_v63 = vpack.c.bf16 %v2303_v35, %v2302_v34 }
 0x619   :  { %3078 = vmatprep.subr.bf16.mxu1 %v3233_v16 }
 0x61c   :  { %3080 = vmatpush1.bf16.msra.mxu1 %v3079_v59  ;;  %v3125_v59 = vpack.c.bf16 %v2305_v57, %v2304_v4 }
 0x61d   :  { %3081 = vmatprep.subr.bf16.mxu1 %v3233_v16 }
 0x620   :  { %3083 = vmatpush1.bf16.msra.mxu1 %v3082_v38  ;;  %v3128_v38 = vpack.c.bf16 %v2307_v1, %v2306_v37 }
 0x621   :  { %3084 = vmatprep.subr.bf16.mxu1 %v3233_v16 }
 0x624   :  { %3086 = vmatpush1.bf16.msra.mxu1 %v3085_v41 }
 0x625   :  { %3087 = vmatprep.subr.bf16.mxu1 %v3233_v16 }
 0x628   :  { %3089 = vmatpush1.bf16.msra.mxu1 %v3088_v46 }
 0x629   :  { %3090 = vmatprep.subr.bf16.mxu1 %v3233_v16 }
 0x62c   :  { %3092 = vmatpush1.bf16.msra.mxu1 %v3091_v49 }
 0x62d   :  { %3093 = vmatprep.subr.bf16.mxu1 %v3233_v16 }
 0x630   :  { %3095 = vmatpush1.bf16.msra.mxu1 %v3094_v8 }
 0x631   :  { %3096 = vmatprep.subr.bf16.mxu1 %v3233_v16 }
 0x634   :  { %3098 = vmatpush1.bf16.msra.mxu1 %v3097_v60 }
 0x635   :  { %3099 = vmatprep.subr.bf16.mxu1 %v3233_v16 }
 0x638   :  { %3101 = vmatpush1.bf16.msra.mxu1 %v3100_v5 }
 0x639   :  { %3102 = vmatprep.subr.bf16.mxu1 %v3233_v16 }
 0x63c   :  { %3104 = vmatpush1.bf16.msra.mxu1 %v3103_v11 }
 0x63d   :  { %3105 = vmatprep.subr.bf16.mxu1 %v3233_v16 }
 0x63f   :  { %1924 = vmatmul.mubr.f32.vlgmr.msra.gmra.mrb[22].mxu1 %v1614_v12 }
 0x640   :  { %2507 = vmatprep.mubr.msk.f32.mxu1 %vm3234_vm9, %v3232_v43  ;;  %3107 = vmatpush3.bf16.msra.mxu1 %v3106_v17 }
 0x641   :  { %3108 = vmatprep.subr.bf16.mxu1 %v3233_v16 }
 0x644   :  { %3110 = vmatpush3.bf16.msra.mxu1 %v3109_v18 }
 0x645   :  { %3111 = vmatprep.subr.bf16.mxu1 %v3233_v16 }
 0x648   :  { %3113 = vmatpush3.bf16.msra.mxu1 %v3112_v3 }
 0x649   :  { %3114 = vmatprep.subr.bf16.mxu1 %v3233_v16 }
 0x64c   :  { %3117 = vmatpush3.bf16.msk.msra.mxu1 %vm4763_vm1, %v3115_v23 }
 0x64d   :  { %3118 = vmatprep.subr.bf16.mxu1 %v3233_v16 }
 0x6be   :  { %v2369_v24 = vpop.f32.mrb[18].mxu1 }
 0x6bf   :  { %v2370_v58 = vpop.f32.mrb[19].mxu1 }
 0x6c0   :  { %v2371_v26 = vadd.f32 %v2370_v58, %v2369_v24 }
 0x6c2   :  { %v1786_v31 = vadd.f32 %v2371_v26, %v2296_v28 }
 0x6de   :  { %v2404_v29 = vpop.f32.mrb[20].mxu1 }
 0x6df   :  { %v2405_v0 = vpop.f32.mrb[21].mxu1 }
 0x6e0   :  { %v2406_v27 = vadd.f32 %v2405_v0, %v2404_v29 }
 0x6e2   :  { %v1856_v30 = vadd.f32 %v2406_v27, %v1786_v31 }
 0x712   :  { %v1925_v55 = vpop.f32.mrb[22].mxu1 }
 0x713   :  { %v1926_v9 = vadd.f32 %v1925_v55, %v1856_v30  ;;  %v1927_v20 = vpop.f32.mrb[23].mxu1 }
 0x715   :  { %v1929_v33 = vmax.f32 %v1926_v9, 0.0 }
 0x717   :  { %2103 = vrot.lane.b32.xlu1 %v1929_v33, %s3240_s15  ;;  %2508 = vmatmul.mubr.msk.f32.vlgmr.msra.gmra.mrb[24].mxu1 %vm1939_vm4, %v1929_v33  ;;  %v2026_v36 = vrot.slane %v1929_v33, 1 }
 0x718   :  { %3120 = vmatpush3.bf16.msra.mxu1 %v3119_v53  ;;  %2526 = vmatprep.mubr.msk.f32.mxu1 %vm3234_vm9, %v3232_v43 }
 0x719   :  { %2178 = vrot.lane.b32.xlu0 %v2026_v36, %s3240_s15  ;;  %3121 = vmatprep.subr.bf16.mxu1 %v3233_v16 }
 0x71c   :  { %3123 = vmatpush3.bf16.msra.mxu1 %v3122_v63 }
 0x71d   :  { %3124 = vmatprep.subr.bf16.mxu1 %v3233_v16 }
 0x720   :  { %3126 = vmatpush3.bf16.msra.mxu1 %v3125_v59 }
 0x721   :  { %3127 = vmatprep.subr.bf16.mxu1 %v3233_v16 }
 0x724   :  { %3130 = vmatpush3.bf16.msk.msra.mxu1 %vm4763_vm1, %v3128_v38 }
 0x725   :  { %3131 = vmatprep.subr.bf16.mxu1 %v3233_v16 }
 0x727   :  { %2527 = vmatmul.mubr.msk.f32.vlgmr.msra.gmra.mrb[24].mxu1 %vm1939_vm4, %v2026_v36 }
 0x728   :  { %3133 = vmatpush3.bf16.msra.mxu1 %v3106_v17  ;;  %2545 = vmatprep.mubr.msk.f32.mxu1 %vm3234_vm9, %v3232_v43 }
 0x729   :  { %3134 = vmatprep.subr.bf16.mxu1 %v3233_v16 }
 0x72c   :  { %3136 = vmatpush3.bf16.msra.mxu1 %v3109_v18 }
 0x72d   :  { %3137 = vmatprep.subr.bf16.mxu1 %v3233_v16 }
 0x730   :  { %3139 = vmatpush3.bf16.msra.mxu1 %v3112_v3 }
 0x731   :  { %3140 = vmatprep.subr.bf16.mxu1 %v3233_v16 }
 0x734   :  { %3143 = vmatpush3.bf16.msk.msra.mxu1 %vm4763_vm1, %v3115_v23 }
 0x735   :  { %3144 = vmatprep.subr.bf16.mxu1 %v3233_v16 }
 0x789   :  { %v2104_v39 = vpop.permute.xlu1 %2103 }
 0x78a   :  { %2546 = vmatmul.mubr.msk.f32.vlgmr.msra.gmra.mrb[26].mxu1 %vm1939_vm4, %v2104_v39 }
 0x78b   :  { %3146 = vmatpush3.bf16.msra.mxu1 %v3119_v53  ;;  %2564 = vmatprep.mubr.msk.f32.mxu1 %vm3234_vm9, %v3232_v43  ;;  %v2179_v40 = vpop.permute.xlu0 %2178  ;;  %v1930_v43 = vld [vmem:[%s5201_s10] sm:$0x1] }
 0x78c   :  { %3147 = vmatprep.subr.bf16.mxu1 %v3233_v16 }
 0x78f   :  { %3149 = vmatpush3.bf16.msra.mxu1 %v3122_v63 }
 0x790   :  { %3150 = vmatprep.subr.bf16.mxu1 %v3233_v16 }
 0x793   :  { %3152 = vmatpush3.bf16.msra.mxu1 %v3125_v59 }
 0x794   :  { %3153 = vmatprep.subr.bf16.mxu1 %v3233_v16 }
 0x797   :  { %3156 = vmatpush3.bf16.msk.msra.mxu1 %vm4763_vm1, %v3128_v38 }
 0x79a   :  { %2565 = vmatmul.mubr.msk.f32.vlgmr.msra.gmra.mrb[26].mxu1 %vm1939_vm4, %v2179_v40 }
 0x7fa   :  { %v2098_v41 = vpop.f32.mrb[24].mxu1 }
 0x7fb   :  { %v2528_v44 = vpop.f32.mrb[25].mxu1  ;;  %v3161_v48 = vadd.f32 %v2098_v41, %v1930_v43 }
 0x86d   :  { %v2248_v45 = vpop.f32.mrb[26].mxu1 }
 0x86e   :  { %v3162_v46 = vadd.f32 %v2248_v45, %v1930_v43  ;;  %v2566_v47 = vpop.f32.mrb[27].mxu1 }
 0x870   :  { %v2257_v49 = vrot.slane %v3162_v46, %v3537_v2 }
 0x872   :  { %v2260_v16 = vsel %vm2259_vm5, %v3161_v48, %v2257_v49 }
 0x873   :  { %v2261_v25 = vmax.f32 %v2260_v16, 0.0 }
 0x875   :  { %2262 = vst [vmem:[#allocation2] sm:$0x3] %v2261_v25 }
 0x876   :  { %3215 = shalt.err (!%p3212_p4)
}
 0x877   :  { %s3216_s28 = scalar_lea.hbm %s5202_s11, 32 }
 0x878   :  { %p3217_p5 = scmp.ne.s32.totalorder %s5202_s11, %s3216_s28  ;;  %p3220_p6 = scmp.lt.u32.totalorder %s3216_s28, %s5202_s11 }
 0x87a   :  { %p3222_p7 = pnand %p3220_p6, %p3217_p5 }
 0x87c   :  { %3225 = shalt.err (!%p3222_p7)
}
 0x87d   :  { %2272 = dma.vmem_to_hbm [thread:$0]  %s2270_s25, 32, %s5202_s11, [#allocation3]  }
 0x87e   :  { %3226 = dma.done.wait [#allocation3], 32  }
 0x87f   :  { %3227 = vsyncadd [#allocation3], 4294967264 }
 0x880   :  { %2276 = vsyncpa [#allocation3], 1 }

</bundles_post_ra>
